<compile_context>
chip_gen: v6e
topology: v6e:2x2x1
jax: 0.10.0
libtpu: 0.0.40
codegen_flags: <defaults>
</compile_context>

<pallas_src>
from functools import partial

import jax
import jax.numpy as jnp
from jax import lax
from jax.experimental import pallas as pl
from jax.experimental.pallas import tpu as pltpu


def _particul_kernel(x_ref, wt_ref, b_ref, mu_ref, inv_sigma_ref,
                     amap_ref, conf_ref, *, enable_normalization):
    # x_ref:          (TN, D, HW)  channel-major feature slabs, HW on the lane axis
    # wt_ref:         (P, D)       fused 1x1-conv weights (transposed), x.dtype
    # b/mu/inv_sigma: (1, P)       f32 (mu already has the conv bias folded in)
    # amap_ref:       (TN, P, HW)  x.dtype
    # conf_ref:       (1, TN, P)   f32
    tn = x_ref.shape[0]
    p, d = wt_ref.shape

    x = x_ref[...]                                               # (TN, D, HW)
    wt_b = jnp.broadcast_to(wt_ref[...][None], (tn, p, d))       # tiny, once per grid step

    # Fused batched 1x1 conv: TN independent (P, D) @ (D, HW) matmuls in one MXU op stream,
    # producing (TN, P, HW) directly (no transpose needed for the output layout).
    v = lax.dot_general(
        wt_b, x,
        dimension_numbers=(((2,), (1,)), ((0,), (0,))),
        preferred_element_type=jnp.float32,
        precision=lax.Precision.HIGHEST)                         # (TN, P, HW) f32

    # Confidence: logistic CDF of the spatial max (conv bias folded into mu on the host).
    vmax = jnp.max(v, axis=-1, keepdims=True)                    # (TN, P, 1), XLU reduce
    conf = jax.nn.sigmoid((vmax[..., 0] - mu_ref[...]) * inv_sigma_ref[...])   # (TN, P)
    conf_ref[0] = conf.astype(conf_ref.dtype)                    # one store per grid step

    if enable_normalization:
        # Numerically stable spatial softmax over H*W (shift-invariant -> bias not needed).
        e = jnp.exp(v - vmax)                                    # (TN, P, HW)
        amap = e / jnp.sum(e, axis=-1, keepdims=True)
    else:
        # Raw correlation maps include the conv bias.
        amap = v + b_ref[...][:, :, None]                        # (1, P, 1) broadcast
    amap_ref[...] = amap.astype(amap_ref.dtype)                  # one store per grid step


def _generation_params():
    """Per-TPU-generation block budget and grid-step preferences."""
    try:
        kind = jax.devices()[0].device_kind.lower()
    except Exception:
        kind = ""
    if "v5" in kind:      # 1 TC, 128 MiB VMEM, 16 MiB scoped default -> raise limit explicitly
        return 14 << 20, False
    if "v6" in kind:      # 1 TC, 128 MiB VMEM, 32 MiB scoped default
        return 24 << 20, False
    if "v7" in kind:      # 2 TCs share HBM, only 64 MiB physical VMEM -> smaller blocks, even G
        return 20 << 20, True
    return 12 << 20, False


def _block_bytes(tn, D, HW, P, itemsize):
    x_io = 2 * tn * D * HW * itemsize        # double-buffered input block
    amap_io = 2 * tn * P * HW * itemsize     # double-buffered output block
    interm = 3 * tn * P * HW * 4             # v / exp / amap f32 intermediates
    wt_b = tn * P * D * itemsize             # broadcast weights for the batched dot
    return x_io + amap_io + interm + wt_b + (64 << 10)


def _pick_samples_per_block(N, D, HW, P, itemsize, budget_bytes, prefer_multi_step):
    """Largest divisor TN of N whose per-step footprint fits the budget.

    On v7x (2 TensorCores) prefer >= 2 grid steps with an even step count so both cores
    get balanced work; on single-core generations a single big step is allowed.
    """
    candidates = [tn for tn in range(1, N + 1)
                  if N % tn == 0 and _block_bytes(tn, D, HW, P, itemsize) <= budget_bytes]
    if not candidates:
        # TODO(synk): for extremely large D*HW even TN=1 exceeds the budget; a spatial (HW)
        # tiling fallback would be needed. We fall back to TN=1 and raise vmem_limit_bytes.
        return 1
    if prefer_multi_step and N >= 2:
        even = [tn for tn in candidates if (N // tn) >= 2 and (N // tn) % 2 == 0]
        if even:
            return max(even)
        multi = [tn for tn in candidates if (N // tn) >= 2]
        if multi:
            return max(multi)
    return max(candidates)


def classwise_particul(x_nchw, weight, bias, mu, sigma, *, enable_normalization=True):
    """x_nchw: (N, D, H, W). weight: (D, P). bias/mu/sigma: (1, P) or (P,).

    Returns (amap (N, P, H, W), conf (N, P)) matching the PyTorch module's forward.
    amap keeps x's dtype (bf16 stays bf16, math is f32); conf is always float32.
    """
    N, D, H, W = x_nchw.shape
    P = weight.shape[1]
    HW = H * W
    compute_dtype = x_nchw.dtype

    # Only free reshapes / tiny parameter transforms — no transposes of the feature slab.
    x = x_nchw.reshape(N, D, HW)
    wt = jnp.asarray(weight).astype(compute_dtype).T                   # (P, D), tiny
    b_row = jnp.asarray(bias, jnp.float32).reshape(1, P)
    mu_row = jnp.asarray(mu, jnp.float32).reshape(1, P) - b_row        # bias folded into mu
    inv_sigma_row = 1.0 / jnp.asarray(sigma, jnp.float32).reshape(1, P)

    itemsize = jnp.dtype(compute_dtype).itemsize
    budget_bytes, prefer_multi_step = _generation_params()
    TN = _pick_samples_per_block(N, D, HW, P, itemsize, budget_bytes, prefer_multi_step)
    G = N // TN

    need = _block_bytes(TN, D, HW, P, itemsize)
    vmem_limit = int(min(max(need + (4 << 20), 16 << 20), 48 << 20))

    amap, conf = pl.pallas_call(
        partial(_particul_kernel, enable_normalization=enable_normalization),
        out_shape=(
            jax.ShapeDtypeStruct((N, P, HW), compute_dtype),
            jax.ShapeDtypeStruct((G, TN, P), jnp.float32),
        ),
        grid_spec=pltpu.PrefetchScalarGridSpec(
            num_scalar_prefetch=0,
            grid=(G,),
            in_specs=[
                pl.BlockSpec((TN, D, HW), lambda g: (g, 0, 0)),   # TN feature slabs
                pl.BlockSpec((P, D), lambda g: (0, 0)),           # fused detector weights
                pl.BlockSpec((1, P), lambda g: (0, 0)),           # conv bias (raw-map path)
                pl.BlockSpec((1, P), lambda g: (0, 0)),           # calibration mu - bias
                pl.BlockSpec((1, P), lambda g: (0, 0)),           # calibration 1/sigma
            ],
            out_specs=[
                pl.BlockSpec((TN, P, HW), lambda g: (g, 0, 0)),
                pl.BlockSpec((1, TN, P), lambda g: (g, 0, 0)),
            ],
        ),
        compiler_params=pltpu.CompilerParams(
            dimension_semantics=("parallel",),
            vmem_limit_bytes=vmem_limit,
        ),
    )(x, wt, b_row, mu_row, inv_sigma_row)

    amap_nphw = amap.reshape(N, P, H, W)        # free reshape, no transpose
    conf_np = conf.reshape(N, P)                # (G, TN, P) -> (N, P) is contiguous
    return amap_nphw, conf_np


def classwise_particul_reference(x_nchw, weight, bias, mu, sigma, enable_normalization=True):
    """Pure-JAX reference (mirrors the PyTorch forward)."""
    N, D, H, W = x_nchw.shape
    P = weight.shape[1]
    v = jnp.einsum('ndhw,dp->nphw', x_nchw.astype(jnp.float32),
                   jnp.asarray(weight, jnp.float32),
                   precision=jax.lax.Precision.HIGHEST) + bias.reshape(1, P, 1, 1)
    vmax = jnp.max(v, axis=(2, 3))                                         # (N, P)
    conf = jax.nn.sigmoid((vmax - mu.reshape(1, P)) / sigma.reshape(1, P))
    if enable_normalization:
        a = jax.nn.softmax(v.reshape(N, P, H * W), axis=-1).reshape(N, P, H, W)
    else:
        a = v
    return a.astype(x_nchw.dtype), conf


if __name__ == "__main__":
    # Small deterministic config: N=8 samples, D=32 channels, P=4 patterns, 8x8 spatial.
    N, D, H, W, P = 8, 32, 8, 8, 4

    key = jax.random.PRNGKey(0)
    kx, kw, kb = jax.random.split(key, 3)
    x = jax.random.normal(kx, (N, D, H, W), dtype=jnp.float32)
    weight = 0.1 * jax.random.normal(kw, (D, P), dtype=jnp.float32)       # 1x1 conv kernels
    bias = 0.01 * jax.random.normal(kb, (1, P), dtype=jnp.float32)        # conv bias
    mu = 0.05 * jnp.ones((1, P), dtype=jnp.float32)                       # calibration offsets
    sigma = 0.7 * jnp.ones((1, P), dtype=jnp.float32)                     # calibration scales

    amap, conf = jax.block_until_ready(
        classwise_particul(x, weight, bias, mu, sigma, enable_normalization=True))
    amap_exp, conf_exp = classwise_particul_reference(
        x, weight, bias, mu, sigma, enable_normalization=True)

    assert amap.shape == (N, P, H, W) and conf.shape == (N, P)
    assert jnp.allclose(amap, amap_exp, atol=2e-6, rtol=1e-4), "activation maps mismatch"
    assert jnp.allclose(conf, conf_exp, atol=1e-6, rtol=1e-5), "confidence mismatch"

    # Also exercise the enable_normalization=False path (raw correlation maps).
    amap2, conf2 = jax.block_until_ready(
        classwise_particul(x, weight, bias, mu, sigma, enable_normalization=False))
    amap2_exp, conf2_exp = classwise_particul_reference(
        x, weight, bias, mu, sigma, enable_normalization=False)
    assert jnp.allclose(amap2, amap2_exp, atol=1e-5, rtol=1e-4), "raw maps mismatch"
    assert jnp.allclose(conf2, conf2_exp, atol=1e-6, rtol=1e-5), "raw confidence mismatch"

    print("KERNEL_OK")
</pallas_src>

<mosaic_0001>
module attributes {stable_mosaic.version = 11 : i64} {
  func.func @_particul_kernel(%arg0: i32, %arg1: memref<8x32x64xf32, #tpu.memory_space<vmem>>, %arg2: memref<4x32xf32, #tpu.memory_space<vmem>>, %arg3: memref<1x4xf32, #tpu.memory_space<vmem>>, %arg4: memref<1x4xf32, #tpu.memory_space<vmem>>, %arg5: memref<1x4xf32, #tpu.memory_space<vmem>>, %arg6: memref<8x4x64xf32, #tpu.memory_space<vmem>>, %arg7: memref<1x8x4xf32, #tpu.memory_space<vmem>>) attributes {dimension_semantics = [#tpu.dimension_semantics<parallel>], iteration_bounds = array<i64: 1>, scalar_prefetch = 0 : i64, scratch_operands = 0 : i64, tpu.core_type = #tpu.core_type<tc>, window_params = [{transform_indices = @transform_0, window_bounds = array<i64: 8, 32, 64>}, {pipeline_mode = #tpu.pipeline_mode<synchronous>, transform_indices = @transform_1, window_bounds = array<i64: 4, 32>}, {pipeline_mode = #tpu.pipeline_mode<synchronous>, transform_indices = @transform_2, window_bounds = array<i64: 1, 4>}, {pipeline_mode = #tpu.pipeline_mode<synchronous>, transform_indices = @transform_3, window_bounds = array<i64: 1, 4>}, {pipeline_mode = #tpu.pipeline_mode<synchronous>, transform_indices = @transform_4, window_bounds = array<i64: 1, 4>}, {transform_indices = @transform_5, window_bounds = array<i64: 8, 4, 64>}, {transform_indices = @transform_6, window_bounds = array<i64: 1, 8, 4>}]} {
    %c0 = arith.constant 0 : index
    %c0_0 = arith.constant 0 : index
    %c0_1 = arith.constant 0 : index
    %0 = vector.load %arg1[%c0, %c0_0, %c0_1] : memref<8x32x64xf32, #tpu.memory_space<vmem>>, vector<8x32x64xf32>
    %c0_2 = arith.constant 0 : index
    %c0_3 = arith.constant 0 : index
    %1 = vector.load %arg2[%c0_2, %c0_3] : memref<4x32xf32, #tpu.memory_space<vmem>>, vector<4x32xf32>
    %2 = vector.shape_cast %1 : vector<4x32xf32> to vector<1x4x32xf32>
    %3 = vector.shape_cast %2 : vector<1x4x32xf32> to vector<1x4x32xf32>
    %4 = vector.broadcast %3 : vector<1x4x32xf32> to vector<8x4x32xf32>
    %cst = arith.constant dense<0.000000e+00> : vector<8x4x64xf32>
    %5 = tpu.matmul %4, %0, %cst {dimension_numbers = #tpu.dot_dimension_numbers<[2], [1], [1], [2], [0, 0, 0, 1, 1, 2], [0], [0]>, precision = #tpu.contract_precision<fp32>} : vector<8x4x32xf32>, vector<8x32x64xf32>, vector<8x4x64xf32> -> vector<8x4x64xf32>
    %cst_4 = arith.constant dense<0xFF800000> : vector<8x4xf32>
    %6 = vector.multi_reduction <maximumf>, %5, %cst_4 [2] : vector<8x4x64xf32> to vector<8x4xf32>
    %7 = vector.shape_cast %6 : vector<8x4xf32> to vector<8x4x1xf32>
    %8 = vector.shape_cast %7 : vector<8x4x1xf32> to vector<8x4xf32>
    %c0_5 = arith.constant 0 : index
    %c0_6 = arith.constant 0 : index
    %9 = vector.load %arg4[%c0_5, %c0_6] : memref<1x4xf32, #tpu.memory_space<vmem>>, vector<1x4xf32>
    %10 = vector.broadcast %9 : vector<1x4xf32> to vector<8x4xf32>
    %11 = arith.subf %8, %10 : vector<8x4xf32>
    %c0_7 = arith.constant 0 : index
    %c0_8 = arith.constant 0 : index
    %12 = vector.load %arg5[%c0_7, %c0_8] : memref<1x4xf32, #tpu.memory_space<vmem>>, vector<1x4xf32>
    %13 = vector.broadcast %12 : vector<1x4xf32> to vector<8x4xf32>
    %14 = arith.mulf %11, %13 : vector<8x4xf32>
    %15 = arith.negf %14 : vector<8x4xf32>
    %16 = math.exp %15 : vector<8x4xf32>
    %cst_9 = arith.constant 1.000000e+00 : f32
    %17 = vector.broadcast %cst_9 : f32 to vector<8x4xf32>
    %18 = arith.addf %17, %16 : vector<8x4xf32>
    %19 = arith.divf %17, %18 : vector<8x4xf32>
    %c0_10 = arith.constant 0 : index
    %c0_11 = arith.constant 0 : index
    %c0_12 = arith.constant 0 : index
    %20 = vector.load %arg7[%c0_10, %c0_11, %c0_12] : memref<1x8x4xf32, #tpu.memory_space<vmem>>, vector<1x8x4xf32>
    %21 = vector.shape_cast %20 : vector<1x8x4xf32> to vector<8x4xf32>
    %22 = vector.shape_cast %19 : vector<8x4xf32> to vector<1x8x4xf32>
    tpu.vector_store %arg7[%c0_10, %c0_11, %c0_12], %22 {strides = array<i32>} : memref<1x8x4xf32, #tpu.memory_space<vmem>>, vector<1x8x4xf32>,
    %23 = vector.broadcast %7 : vector<8x4x1xf32> to vector<8x4x64xf32>
    %24 = arith.subf %5, %23 : vector<8x4x64xf32>
    %25 = math.exp %24 : vector<8x4x64xf32>
    %cst_13 = arith.constant dense<0.000000e+00> : vector<8x4xf32>
    %26 = vector.multi_reduction <add>, %25, %cst_13 [2] : vector<8x4x64xf32> to vector<8x4xf32>
    %27 = vector.shape_cast %26 : vector<8x4xf32> to vector<8x4x1xf32>
    %28 = vector.broadcast %27 : vector<8x4x1xf32> to vector<8x4x64xf32>
    %29 = arith.divf %25, %28 : vector<8x4x64xf32>
    %c0_14 = arith.constant 0 : index
    %c0_15 = arith.constant 0 : index
    %c0_16 = arith.constant 0 : index
    %30 = vector.load %arg6[%c0_14, %c0_15, %c0_16] : memref<8x4x64xf32, #tpu.memory_space<vmem>>, vector<8x4x64xf32>
    tpu.vector_store %arg6[%c0_14, %c0_15, %c0_16], %29 {strides = array<i32>} : memref<8x4x64xf32, #tpu.memory_space<vmem>>, vector<8x4x64xf32>,
    return
  }
  func.func @transform_0(%arg0: i32) -> (i32, i32, i32) {
    %c0_i32 = arith.constant 0 : i32
    %c0_i32_0 = arith.constant 0 : i32
    %c0_i32_1 = arith.constant 0 : i32
    return %arg0, %c0_i32, %c0_i32_0 : i32, i32, i32
  }
  func.func @transform_1(%arg0: i32) -> (i32, i32) {
    %c0_i32 = arith.constant 0 : i32
    %c0_i32_0 = arith.constant 0 : i32
    %c0_i32_1 = arith.constant 0 : i32
    return %c0_i32, %c0_i32_0 : i32, i32
  }
  func.func @transform_2(%arg0: i32) -> (i32, i32) {
    %c0_i32 = arith.constant 0 : i32
    %c0_i32_0 = arith.constant 0 : i32
    %c0_i32_1 = arith.constant 0 : i32
    return %c0_i32, %c0_i32_0 : i32, i32
  }
  func.func @transform_3(%arg0: i32) -> (i32, i32) {
    %c0_i32 = arith.constant 0 : i32
    %c0_i32_0 = arith.constant 0 : i32
    %c0_i32_1 = arith.constant 0 : i32
    return %c0_i32, %c0_i32_0 : i32, i32
  }
  func.func @transform_4(%arg0: i32) -> (i32, i32) {
    %c0_i32 = arith.constant 0 : i32
    %c0_i32_0 = arith.constant 0 : i32
    %c0_i32_1 = arith.constant 0 : i32
    return %c0_i32, %c0_i32_0 : i32, i32
  }
  func.func @transform_5(%arg0: i32) -> (i32, i32, i32) {
    %c0_i32 = arith.constant 0 : i32
    %c0_i32_0 = arith.constant 0 : i32
    %c0_i32_1 = arith.constant 0 : i32
    return %arg0, %c0_i32, %c0_i32_0 : i32, i32, i32
  }
  func.func @transform_6(%arg0: i32) -> (i32, i32, i32) {
    %c0_i32 = arith.constant 0 : i32
    %c0_i32_0 = arith.constant 0 : i32
    %c0_i32_1 = arith.constant 0 : i32
    return %arg0, %c0_i32, %c0_i32_0 : i32, i32, i32
  }
}

</mosaic_0001>

<bundles_post_ra>
// kernel: tpu_custom_call.1
= control target key start
LH: loop header
LB: loop body
LE: loop exit
PB: predicated region body
PF: predicated region fallthrough
CT: control target
= control target key end

     0   :  { %12 = vsyncpa [#allocation3], 0  ;;  %s6136_s0 = inlined_call_operand.hbm [shape: f32[8,32,64], index: 0, kind: input, shape index: {}]   ;;  %s6137_s1 = inlined_call_operand.hbm [shape: f32[4,32], index: 1, kind: input, shape index: {}]   ;;  %s6138_s2 = inlined_call_operand.vmem [shape: f32[1,4], index: 2, kind: input, shape index: {}]   ;;  %s6139_s3 = inlined_call_operand.vmem [shape: f32[1,4], index: 3, kind: input, shape index: {}]   ;;  %s6140_s4 = inlined_call_operand.vmem [shape: f32[1,4], index: 4, kind: input, shape index: {}]   ;;  %s6141_s5 = inlined_call_operand.hbm [shape: f32[8,4,64], index: 5, kind: output, shape index: {0}]   ;;  %s6142_s6 = inlined_call_operand.vmem [shape: f32[1,8,4], index: 6, kind: output, shape index: {1}]  }
   0x1   :  { %13 = vsyncpa [#allocation6], 0 }
   0x2   :  { %14 = vsyncpa [#allocation4], 0  ;;  %s5172_s21 = smov [#allocation2]  }
   0x3   :  { %s20_s22 = sshll.u32 %s5172_s21, 4  ;;  %s21_s22 = int_to_ptr.vmem [resolvable:$true] %s20_s22 }
   0x4   :  { %s5114_s23 = scalar_lea.vmem %s21_s22, 4096  ;;  %p5119_p1 = scmp.lt.s32.totalorder %s21_s22, %s21_s22 }
   0x5   :  { %p5115_p0 = scmp.ne.s32.totalorder %s21_s22, %s5114_s23  ;;  %p5120_p2 = scmp.lt.s32.totalorder %s5114_s23, %s5114_s23 }
   0x7   :  { %p5121_p3 = por %p5120_p2, %p5119_p1 }
   0x9   :  { %p5122_p4 = pnand %p5121_p3, %p5115_p0 }
   0xb   :  { %5125 = shalt.err (!%p5122_p4)
}
   0xc   :  { %s5173_s2 = smov 128   ;;  %s5174_s24 = smov 8  }
   0xd   :  { %26 = dma.hbm_to_vmem [thread:$0]  %s6136_s0, 4096, %s21_s22, [#allocation3], %s5173_s2, %s5173_s2, %s5174_s24  }
   0xe   :  { %s5175_s27 = smov [#allocation5]  }
   0xf   :  { %s33_s28 = sshll.u32 %s5175_s27, 4  ;;  %s34_s28 = int_to_ptr.vmem [resolvable:$true] %s33_s28 }
  0x10   :  { %s5134_s29 = scalar_lea.vmem %s34_s28, 64  ;;  %p5139_p6 = scmp.lt.s32.totalorder %s34_s28, %s34_s28 }
  0x11   :  { %p5135_p5 = scmp.ne.s32.totalorder %s34_s28, %s5134_s29  ;;  %p5140_p7 = scmp.lt.s32.totalorder %s5134_s29, %s5134_s29 }
  0x13   :  { %p5141_p8 = por %p5140_p7, %p5139_p6 }
  0x15   :  { %p5142_p9 = pnand %p5141_p8, %p5135_p5 }
  0x17   :  { %5145 = shalt.err (!%p5142_p9)
}
  0x18   :  { %36 = dma.hbm_to_vmem [thread:$0]  %s6137_s1, 64, %s34_s28, [#allocation6]  }
  0x19   :  { %5166 = dma.done.wait [#allocation3], 4096  }
  0x1a   :  { %5167 = vsyncadd [#allocation3], 4294963200 }
  0x1b   :  { %5168 = dma.done.wait [#allocation6], 64  }
  0x1c   :  { %5169 = vsyncadd [#allocation6], 4294967232  ;;  %v5176_v0 = vmov 0.0   ;;  %vm5177_vm0 = vmmov 0   ;;  %vm82_vm1 = vcmask 261120   ;;  %v52_v1 = vld [vmem:[#allocation2 + $0x18] sm:$0xff] }
  0x1d   :  { %4502 = vmatprep.subr.mxu0 %v5176_v0  ;;  %4513 = vmatprep.subr.mxu1 %v5176_v0  ;;  %v51_v2 = vld [vmem:[#allocation2 + $0x10] sm:$0xff]  ;;  %v50_v3 = vld [vmem:[#allocation2 + $0x8] sm:$0xff]  ;;  %v5229_v4 = vand.u32 4294901760, %v52_v1  ;;  %v49_v7 = vld [vmem:[#allocation2] sm:$0xff]  ;;  %vm3966_vm2 = vcmask 519168   ;;  %vm4141_vm3 = vcmask 1041409  }
  0x1e   :  { %4510 = vmatprep.mubr.msk.f32.mxu0 %vm5177_vm0, %v5176_v0  ;;  %4521 = vmatprep.mubr.msk.f32.mxu1 %vm5177_vm0, %v5176_v0  ;;  %v5231_v5 = vand.u32 4294901760, %v51_v2  ;;  %v5233_v6 = vand.u32 4294901760, %v50_v3  ;;  %v81_v8 = vld [vmem:[#allocation5] sm:$0xf]  ;;  %v5235_v9 = vand.u32 4294901760, %v49_v7  ;;  %v56_v32 = vld [vmem:[#allocation2 + $0x38] sm:$0xff] }
  0x1f   :  { %v84_v10 = vsel %vm82_vm1, %v81_v8, 0  ;;  %4503 = vmatpush3.msra.mxu0 %v5229_v4  ;;  %v191_v11 = vsub.f32 %v52_v1, %v5229_v4  ;;  %v5284_v33 = vand.u32 4294901760, %v56_v32  ;;  %v55_v34 = vld [vmem:[#allocation2 + $0x30] sm:$0xff]  ;;  %v54_v35 = vld [vmem:[#allocation2 + $0x28] sm:$0xff]  ;;  %v53_v38 = vld [vmem:[#allocation2 + $0x20] sm:$0xff]  ;;  %vm4143_vm4 = vcmask 1042434  }
  0x20   :  { %v5239_v12 = vand.u32 4294901760, %v84_v10  ;;  %v198_v13 = vsub.f32 %v51_v2, %v5231_v5  ;;  %v5243_v14 = vsub.f32 %v50_v3, %v5233_v6  ;;  %4504 = vmatprep.subr.mxu0 %v5176_v0  ;;  %v5247_v15 = vsub.f32 %v49_v7, %v5235_v9  ;;  %v60_v56 = vld [vmem:[#allocation2 + $0x58] sm:$0xff]  ;;  %v59_v58 = vld [vmem:[#allocation2 + $0x50] sm:$0xff]  ;;  %v58_v59 = vld [vmem:[#allocation2 + $0x48] sm:$0xff]  ;;  %s5179_s10 = smov [#allocation7]  }
  0x21   :  { %4505 = vmatpush3.msra.mxu0 %v5231_v5  ;;  %v192_v16 = vand.u32 4294901760, %v191_v11  ;;  %v5291_v36 = vand.u32 4294901760, %v55_v34  ;;  %v5296_v37 = vsub.f32 %v56_v32, %v5284_v33  ;;  %v5299_v39 = vand.u32 4294901760, %v54_v35  ;;  %v57_v62 = vld [vmem:[#allocation2 + $0x40] sm:$0xff]  ;;  %s4235_s11 = sshll.u32 %s5179_s10, 4  ;;  %s4236_s11 = int_to_ptr.vmem [resolvable:$true] %s4235_s11 }
  0x22   :  { %v5251_v17 = vsub.f32 %v84_v10, %v5239_v12  ;;  %v199_v18 = vand.u32 4294901760, %v198_v13  ;;  %v206_v19 = vand.u32 4294901760, %v5243_v14  ;;  %4506 = vmatprep.subr.mxu0 %v5176_v0  ;;  %v213_v20 = vand.u32 4294901760, %v5247_v15  ;;  %s5146_s12 = scalar_lea.vmem %s4236_s11, 512  ;;  %p5151_p11 = scmp.lt.s32.totalorder %s4236_s11, %s4236_s11 }
  0x23   :  { %4507 = vmatpush3.msra.mxu0 %v5233_v6  ;;  %v193_v21 = vsub.f32 %v191_v11, %v192_v16  ;;  %v5307_v40 = vsub.f32 %v55_v34, %v5291_v36  ;;  %v5309_v41 = vand.u32 4294901760, %v53_v38  ;;  %v677_v42 = vand.u32 4294901760, %v5296_v37  ;;  %p5147_p10 = scmp.ne.s32.totalorder %s4236_s11, %s5146_s12  ;;  %p5152_p12 = scmp.lt.s32.totalorder %s5146_s12, %s5146_s12 }
  0x24   :  { %v5258_v22 = vand.u32 4294901760, %v5251_v17  ;;  %v200_v23 = vsub.f32 %v198_v13, %v199_v18  ;;  %v207_v24 = vsub.f32 %v5243_v14, %v206_v19  ;;  %4508 = vmatprep.subr.mxu0 %v5176_v0  ;;  %v214_v28 = vsub.f32 %v5247_v15, %v213_v20 }
  0x25   :  { %4509 = vmatpush3.msra.mxu0 %v5235_v9  ;;  %v194_v25 = vand.u32 4294901760, %v193_v21  ;;  %v5316_v43 = vsub.f32 %v54_v35, %v5299_v39  ;;  %v5325_v44 = vsub.f32 %v53_v38, %v5309_v41  ;;  %v684_v45 = vand.u32 4294901760, %v5307_v40  ;;  %v63_v21 = vld [vmem:[#allocation2 + $0x70] sm:$0xff]  ;;  %p5153_p13 = por %p5152_p12, %p5151_p11 }
  0x26   :  { %v158_v26 = vsub.f32 %v5251_v17, %v5258_v22  ;;  %v201_v27 = vand.u32 4294901760, %v200_v23  ;;  %4524 = vmatprep.subr.mxu0 %v5176_v0  ;;  %v208_v30 = vand.u32 4294901760, %v207_v24  ;;  %v215_v31 = vand.u32 4294901760, %v214_v28  ;;  %v62_v23 = vld [vmem:[#allocation2 + $0x68] sm:$0xff] }
  0x27   :  { %4514 = vmatpush3.msra.mxu1 %v194_v25  ;;  %v678_v46 = vsub.f32 %v5296_v37, %v677_v42  ;;  %v691_v47 = vand.u32 4294901760, %v5316_v43  ;;  %v685_v48 = vsub.f32 %v5307_v40, %v684_v45  ;;  %v698_v49 = vand.u32 4294901760, %v5325_v44  ;;  %p5154_p0 = pnand %p5153_p13, %p5147_p10 }
  0x28   :  { %v5269_v29 = vand.u32 4294901760, %v158_v26  ;;  %4515 = vmatprep.subr.mxu1 %v5176_v0  ;;  %v5380_v57 = vand.u32 4294901760, %v60_v56  ;;  %v5389_v60 = vand.u32 4294901760, %v59_v58  ;;  %v5399_v63 = vand.u32 4294901760, %v58_v59  ;;  %v61_v26 = vld [vmem:[#allocation2 + $0x60] sm:$0xff] }
  0x29   :  { %4516 = vmatpush3.msra.mxu1 %v201_v27  ;;  %v679_v50 = vand.u32 4294901760, %v678_v46  ;;  %v692_v51 = vsub.f32 %v5316_v43, %v691_v47  ;;  %v686_v52 = vand.u32 4294901760, %v685_v48  ;;  %v699_v53 = vsub.f32 %v5325_v44, %v698_v49  ;;  %v66_v48 = vld [vmem:[#allocation2 + $0x88] sm:$0xff] }
  0x2a   :  { %4511 = vmatmul.mubr.f32.vlgmr.msra.gmra.mxu0 %v5269_v29  ;;  %4517 = vmatprep.subr.mxu1 %v5176_v0  ;;  %v5394_v61 = vsub.f32 %v60_v56, %v5380_v57  ;;  %v5407_v1 = vsub.f32 %v59_v58, %v5389_v60  ;;  %v5409_v2 = vand.u32 4294901760, %v57_v62  ;;  %v5491_v24 = vand.u32 4294901760, %v63_v21 }
  0x2b   :  { %4525 = vmatpush3.msra.mxu0 %v191_v11  ;;  %4518 = vmatpush3.msra.mxu1 %v208_v30  ;;  %v693_v54 = vand.u32 4294901760, %v692_v51  ;;  %v700_v55 = vand.u32 4294901760, %v699_v53  ;;  %v5501_v27 = vand.u32 4294901760, %v62_v23  ;;  %v5511_v30 = vand.u32 4294901760, %v61_v26  ;;  %v65_v51 = vld [vmem:[#allocation2 + $0x80] sm:$0xff] }
  0x2c   :  { %4526 = vmatprep.subr.mxu0 %v5176_v0  ;;  %4519 = vmatprep.subr.mxu1 %v5176_v0  ;;  %v1162_v3 = vand.u32 4294901760, %v5394_v61  ;;  %v5509_v28 = vsub.f32 %v63_v21, %v5491_v24  ;;  %vm4145_vm5 = vcmask 1043459   ;;  %vm4147_vm6 = vcmask 1044484  }
  0x2d   :  { %4527 = vmatpush3.msra.mxu0 %v198_v13  ;;  %4520 = vmatpush3.msra.mxu1 %v215_v31  ;;  %v5520_v32 = vsub.f32 %v62_v23, %v5501_v27  ;;  %vm4149_vm7 = vcmask 1045509   ;;  %vm4151_vm8 = vcmask 1046534   ;;  %vm4153_vm9 = vcmask 1047559  }
  0x2e   :  { %4528 = vmatprep.subr.mxu0 %v5176_v0  ;;  %4522 = vmatmul.mubr.f32.vlgmr.msra.gmra.mxu1 %v5239_v12  ;;  %v1163_v7 = vsub.f32 %v5394_v61, %v1162_v3  ;;  %v1654_v34 = vand.u32 4294901760, %v5509_v28  ;;  %vm4156_vm10 = vcmask 31744  }
  0x2f   :  { %4529 = vmatpush3.msra.mxu0 %v5243_v14  ;;  %4535 = vmatprep.subr.mxu1 %v5176_v0 }
  0x30   :  { %4530 = vmatprep.subr.mxu0 %v5176_v0  ;;  %4532 = vmatprep.mubr.msk.f32.mxu0 %vm5177_vm0, %v5176_v0  ;;  %v1164_v11 = vand.u32 4294901760, %v1163_v7 }
  0x31   :  { %4531 = vmatpush3.msra.mxu0 %v5247_v15  ;;  %4536 = vmatpush3.msra.mxu1 %v5229_v4 }
  0x32   :  { %4533 = vmatmul.mubr.f32.vlgmr.msra.gmra.mxu0 %v5251_v17  ;;  %4537 = vmatprep.subr.mxu1 %v5176_v0 }
  0x33   :  { %4546 = vmatprep.subr.mxu0 %v5176_v0  ;;  %4538 = vmatpush3.msra.mxu1 %v5231_v5 }
  0x34   :  { %4547 = vmatpush3.msra.mxu0 %v192_v16  ;;  %4539 = vmatprep.subr.mxu1 %v5176_v0 }
  0x35   :  { %4548 = vmatprep.subr.mxu0 %v5176_v0  ;;  %4540 = vmatpush3.msra.mxu1 %v5233_v6 }
  0x36   :  { %4549 = vmatpush3.msra.mxu0 %v199_v18  ;;  %4541 = vmatprep.subr.mxu1 %v5176_v0 }
  0x37   :  { %4550 = vmatprep.subr.mxu0 %v5176_v0  ;;  %4542 = vmatpush3.msra.mxu1 %v5235_v9 }
  0x38   :  { %4543 = vmatprep.mubr.msk.f32.mxu1 %vm5177_vm0, %v5176_v0  ;;  %4551 = vmatpush3.msra.mxu0 %v206_v19  ;;  %v64_v19 = vld [vmem:[#allocation2 + $0x78] sm:$0xff] }
  0x39   :  { %4544 = vmatmul.mubr.f32.vlgmr.msra.gmra.mxu1 %v5258_v22  ;;  %4552 = vmatprep.subr.mxu0 %v5176_v0 }
  0x3a   :  { %4557 = vmatprep.subr.mxu1 %v5176_v0  ;;  %4553 = vmatpush3.msra.mxu0 %v213_v20  ;;  %v5482_v20 = vand.u32 4294901760, %v64_v19 }
  0x3b   :  { %4554 = vmatprep.mubr.msk.f32.mxu0 %vm5177_vm0, %v5176_v0  ;;  %4558 = vmatpush3.msra.mxu1 %v5229_v4  ;;  %v5418_v4 = vsub.f32 %v58_v59, %v5399_v63 }
  0x3c   :  { %4555 = vmatmul.mubr.f32.vlgmr.msra.gmra.mxu0 %v5239_v12  ;;  %4559 = vmatprep.subr.mxu1 %v5176_v0  ;;  %v5496_v25 = vsub.f32 %v64_v19, %v5482_v20 }
  0x3d   :  { %4568 = vmatprep.subr.mxu0 %v5176_v0  ;;  %4560 = vmatpush3.msra.mxu1 %v5231_v5  ;;  %v5427_v5 = vsub.f32 %v57_v62, %v5409_v2  ;;  %v1176_v8 = vand.u32 4294901760, %v5418_v4 }
  0x3e   :  { %4569 = vmatpush3.msra.mxu0 %v5284_v33  ;;  %4561 = vmatprep.subr.mxu1 %v5176_v0  ;;  %v1647_v31 = vand.u32 4294901760, %v5496_v25 }
  0x3f   :  { %4570 = vmatprep.subr.mxu0 %v5176_v0  ;;  %4562 = vmatpush3.msra.mxu1 %v5233_v6  ;;  %v1169_v6 = vand.u32 4294901760, %v5407_v1  ;;  %v1183_v10 = vand.u32 4294901760, %v5427_v5  ;;  %v1177_v13 = vsub.f32 %v5418_v4, %v1176_v8 }
  0x40   :  { %4571 = vmatpush3.msra.mxu0 %v5291_v36  ;;  %4563 = vmatprep.subr.mxu1 %v5176_v0  ;;  %v1648_v35 = vsub.f32 %v5496_v25, %v1647_v31 }
  0x41   :  { %4572 = vmatprep.subr.mxu0 %v5176_v0  ;;  %4564 = vmatpush3.msra.mxu1 %v5235_v9  ;;  %v1170_v9 = vsub.f32 %v5407_v1, %v1169_v6  ;;  %v1184_v15 = vsub.f32 %v5427_v5, %v1183_v10  ;;  %v1178_v16 = vand.u32 4294901760, %v1177_v13  ;;  %v69_v13 = vld [vmem:[#allocation2 + $0xa0] sm:$0xff] }
  0x42   :  { %4565 = vmatprep.mubr.msk.f32.mxu1 %vm5177_vm0, %v5176_v0  ;;  %4573 = vmatpush3.msra.mxu0 %v5299_v39 }
  0x43   :  { %4566 = vmatmul.mubr.f32.vlgmr.msra.gmra.mxu1 %v5239_v12  ;;  %4574 = vmatprep.subr.mxu0 %v5176_v0  ;;  %v1171_v14 = vand.u32 4294901760, %v1170_v9  ;;  %v1185_v18 = vand.u32 4294901760, %v1184_v15  ;;  %v70_v9 = vld [vmem:[#allocation2 + $0xa8] sm:$0xff] }
  0x44   :  { %4579 = vmatprep.subr.mxu1 %v5176_v0  ;;  %4575 = vmatpush3.msra.mxu0 %v5309_v41 }
  0x45   :  { %4580 = vmatpush3.msra.mxu1 %v679_v50  ;;  %4576 = vmatprep.mubr.msk.f32.mxu0 %vm5177_vm0, %v5176_v0 }
  0x46   :  { %4581 = vmatprep.subr.mxu1 %v5176_v0  ;;  %4590 = vmatprep.subr.mxu0 %v5176_v0 }
  0x47   :  { %4577 = vmatmul.mubr.f32.vlgmr.msra.gmra.mxu0 %v5269_v29  ;;  %4582 = vmatpush3.msra.mxu1 %v686_v52  ;;  %v5603_v52 = vand.u32 4294901760, %v66_v48 }
  0x48   :  { %4591 = vmatpush3.msra.mxu0 %v5296_v37  ;;  %4583 = vmatprep.subr.mxu1 %v5176_v0  ;;  %v1655_v37 = vsub.f32 %v5509_v28, %v1654_v34 }
  0x49   :  { %4592 = vmatprep.subr.mxu0 %v5176_v0  ;;  %4584 = vmatpush3.msra.mxu1 %v693_v54  ;;  %v5613_v54 = vand.u32 4294901760, %v65_v51  ;;  %v5622_v56 = vsub.f32 %v66_v48, %v5603_v52 }
  0x4a   :  { %4593 = vmatpush3.msra.mxu0 %v5307_v40  ;;  %4585 = vmatprep.subr.mxu1 %v5176_v0 }
  0x4b   :  { %4594 = vmatprep.subr.mxu0 %v5176_v0  ;;  %4586 = vmatpush3.msra.mxu1 %v700_v55 }
  0x4c   :  { %4587 = vmatprep.mubr.msk.f32.mxu1 %vm5177_vm0, %v5176_v0  ;;  %4595 = vmatpush3.msra.mxu0 %v5316_v43 }
  0x4d   :  { %4588 = vmatmul.mubr.f32.vlgmr.msra.gmra.mxu1 %v5239_v12  ;;  %4596 = vmatprep.subr.mxu0 %v5176_v0 }
  0x4e   :  { %4601 = vmatprep.subr.mxu1 %v5176_v0  ;;  %4597 = vmatpush3.msra.mxu0 %v5325_v44 }
  0x4f   :  { %4598 = vmatprep.mubr.msk.f32.mxu0 %vm5177_vm0, %v5176_v0  ;;  %4602 = vmatpush3.msra.mxu1 %v5284_v33 }
  0x50   :  { %4599 = vmatmul.mubr.f32.vlgmr.msra.gmra.mxu0 %v5251_v17  ;;  %4603 = vmatprep.subr.mxu1 %v5176_v0 }
  0x51   :  { %4612 = vmatprep.subr.mxu0 %v5176_v0  ;;  %4604 = vmatpush3.msra.mxu1 %v5291_v36 }
  0x52   :  { %4613 = vmatpush3.msra.mxu0 %v677_v42  ;;  %4605 = vmatprep.subr.mxu1 %v5176_v0 }
  0x53   :  { %4614 = vmatprep.subr.mxu0 %v5176_v0  ;;  %4606 = vmatpush3.msra.mxu1 %v5299_v39 }
  0x54   :  { %4615 = vmatpush3.msra.mxu0 %v684_v45  ;;  %4607 = vmatprep.subr.mxu1 %v5176_v0  ;;  %v68_v45 = vld [vmem:[#allocation2 + $0x98] sm:$0xff] }
  0x55   :  { %4616 = vmatprep.subr.mxu0 %v5176_v0  ;;  %4608 = vmatpush3.msra.mxu1 %v5309_v41  ;;  %v5584_v46 = vand.u32 4294901760, %v68_v45 }
  0x56   :  { %4609 = vmatprep.mubr.msk.f32.mxu1 %vm5177_vm0, %v5176_v0  ;;  %4617 = vmatpush3.msra.mxu0 %v691_v47  ;;  %v67_v47 = vld [vmem:[#allocation2 + $0x90] sm:$0xff] }
  0x57   :  { %4610 = vmatmul.mubr.f32.vlgmr.msra.gmra.mxu1 %v5258_v22  ;;  %4618 = vmatprep.subr.mxu0 %v5176_v0  ;;  %v5598_v50 = vsub.f32 %v68_v45, %v5584_v46 }
  0x58   :  { %4623 = vmatprep.subr.mxu1 %v5176_v0  ;;  %4619 = vmatpush3.msra.mxu0 %v698_v49  ;;  %v5593_v49 = vand.u32 4294901760, %v67_v47 }
  0x59   :  { %4620 = vmatprep.mubr.msk.f32.mxu0 %vm5177_vm0, %v5176_v0  ;;  %4624 = vmatpush3.msra.mxu1 %v5284_v33  ;;  %v5529_v33 = vsub.f32 %v61_v26, %v5511_v30  ;;  %v2132_v55 = vand.u32 4294901760, %v5598_v50 }
  0x5a   :  { %4621 = vmatmul.mubr.f32.vlgmr.msra.gmra.mxu0 %v5239_v12  ;;  %4625 = vmatprep.subr.mxu1 %v5176_v0  ;;  %v5611_v53 = vsub.f32 %v67_v47, %v5593_v49 }
  0x5b   :  { %4634 = vmatprep.subr.mxu0 %v5176_v0  ;;  %4626 = vmatpush3.msra.mxu1 %v5291_v36  ;;  %v1661_v36 = vand.u32 4294901760, %v5520_v32  ;;  %v1668_v38 = vand.u32 4294901760, %v5529_v33  ;;  %v2133_v59 = vsub.f32 %v5598_v50, %v2132_v55 }
  0x5c   :  { %4635 = vmatpush3.msra.mxu0 %v5380_v57  ;;  %4627 = vmatprep.subr.mxu1 %v5176_v0  ;;  %v2139_v58 = vand.u32 4294901760, %v5611_v53 }
  0x5d   :  { %4636 = vmatprep.subr.mxu0 %v5176_v0  ;;  %4628 = vmatpush3.msra.mxu1 %v5299_v39  ;;  %v1649_v39 = vand.u32 4294901760, %v1648_v35  ;;  %v1662_v40 = vsub.f32 %v5520_v32, %v1661_v36  ;;  %v1669_v42 = vsub.f32 %v5529_v33, %v1668_v38 }
  0x5e   :  { %4637 = vmatpush3.msra.mxu0 %v5389_v60  ;;  %4629 = vmatprep.subr.mxu1 %v5176_v0 }
  0x5f   :  { %4638 = vmatprep.subr.mxu0 %v5176_v0  ;;  %4630 = vmatpush3.msra.mxu1 %v5309_v41  ;;  %v1656_v41 = vand.u32 4294901760, %v1655_v37  ;;  %v1663_v43 = vand.u32 4294901760, %v1662_v40  ;;  %v1670_v44 = vand.u32 4294901760, %v1669_v42  ;;  %v74_v37 = vld [vmem:[#allocation2 + $0xc8] sm:$0xff]  ;;  %v73_v40 = vld [vmem:[#allocation2 + $0xc0] sm:$0xff] }
  0x60   :  { %4631 = vmatprep.mubr.msk.f32.mxu1 %vm5177_vm0, %v5176_v0  ;;  %4639 = vmatpush3.msra.mxu0 %v5399_v63 }
  0x61   :  { %4632 = vmatmul.mubr.f32.vlgmr.msra.gmra.mxu1 %v5239_v12  ;;  %4640 = vmatprep.subr.mxu0 %v5176_v0 }
  0x62   :  { %4645 = vmatprep.subr.mxu1 %v5176_v0  ;;  %4641 = vmatpush3.msra.mxu0 %v5409_v2 }
  0x63   :  { %4646 = vmatpush3.msra.mxu1 %v1164_v11  ;;  %4642 = vmatprep.mubr.msk.f32.mxu0 %vm5177_vm0, %v5176_v0 }
  0x64   :  { %4647 = vmatprep.subr.mxu1 %v5176_v0  ;;  %4656 = vmatprep.subr.mxu0 %v5176_v0 }
  0x65   :  { %4643 = vmatmul.mubr.f32.vlgmr.msra.gmra.mxu0 %v5269_v29  ;;  %4648 = vmatpush3.msra.mxu1 %v1171_v14  ;;  %v5705_v14 = vand.u32 4294901760, %v70_v9 }
  0x66   :  { %4657 = vmatpush3.msra.mxu0 %v5394_v61  ;;  %4649 = vmatprep.subr.mxu1 %v5176_v0  ;;  %v2140_v61 = vsub.f32 %v5611_v53, %v2139_v58 }
  0x67   :  { %4658 = vmatprep.subr.mxu0 %v5176_v0  ;;  %4650 = vmatpush3.msra.mxu1 %v1178_v16  ;;  %v5715_v16 = vand.u32 4294901760, %v69_v13  ;;  %v5724_v19 = vsub.f32 %v70_v9, %v5705_v14 }
  0x68   :  { %4659 = vmatpush3.msra.mxu0 %v5407_v1  ;;  %4651 = vmatprep.subr.mxu1 %v5176_v0 }
  0x69   :  { %4660 = vmatprep.subr.mxu0 %v5176_v0  ;;  %4652 = vmatpush3.msra.mxu1 %v1185_v18 }
  0x6a   :  { %4653 = vmatprep.mubr.msk.f32.mxu1 %vm5177_vm0, %v5176_v0  ;;  %4661 = vmatpush3.msra.mxu0 %v5418_v4 }
  0x6b   :  { %4654 = vmatmul.mubr.f32.vlgmr.msra.gmra.mxu1 %v5239_v12  ;;  %4662 = vmatprep.subr.mxu0 %v5176_v0 }
  0x6c   :  { %4667 = vmatprep.subr.mxu1 %v5176_v0  ;;  %4663 = vmatpush3.msra.mxu0 %v5427_v5 }
  0x6d   :  { %4664 = vmatprep.mubr.msk.f32.mxu0 %vm5177_vm0, %v5176_v0  ;;  %4668 = vmatpush3.msra.mxu1 %v5380_v57 }
  0x6e   :  { %4665 = vmatmul.mubr.f32.vlgmr.msra.gmra.mxu0 %v5251_v17  ;;  %4669 = vmatprep.subr.mxu1 %v5176_v0 }
  0x6f   :  { %4678 = vmatprep.subr.mxu0 %v5176_v0  ;;  %4670 = vmatpush3.msra.mxu1 %v5389_v60 }
  0x70   :  { %4679 = vmatpush3.msra.mxu0 %v1162_v3  ;;  %4671 = vmatprep.subr.mxu1 %v5176_v0 }
  0x71   :  { %4680 = vmatprep.subr.mxu0 %v5176_v0  ;;  %4672 = vmatpush3.msra.mxu1 %v5399_v63 }
  0x72   :  { %4681 = vmatpush3.msra.mxu0 %v1169_v6  ;;  %4673 = vmatprep.subr.mxu1 %v5176_v0  ;;  %v72_v6 = vld [vmem:[#allocation2 + $0xb8] sm:$0xff] }
  0x73   :  { %4682 = vmatprep.subr.mxu0 %v5176_v0  ;;  %4674 = vmatpush3.msra.mxu1 %v5409_v2  ;;  %v5686_v7 = vand.u32 4294901760, %v72_v6 }
  0x74   :  { %4675 = vmatprep.mubr.msk.f32.mxu1 %vm5177_vm0, %v5176_v0  ;;  %4683 = vmatpush3.msra.mxu0 %v1176_v8  ;;  %v71_v8 = vld [vmem:[#allocation2 + $0xb0] sm:$0xff] }
  0x75   :  { %4676 = vmatmul.mubr.f32.vlgmr.msra.gmra.mxu1 %v5258_v22  ;;  %4684 = vmatprep.subr.mxu0 %v5176_v0  ;;  %v5700_v11 = vsub.f32 %v72_v6, %v5686_v7 }
  0x76   :  { %4689 = vmatprep.subr.mxu1 %v5176_v0  ;;  %4685 = vmatpush3.msra.mxu0 %v1183_v10  ;;  %v5695_v10 = vand.u32 4294901760, %v71_v8 }
  0x77   :  { %4686 = vmatprep.mubr.msk.f32.mxu0 %vm5177_vm0, %v5176_v0  ;;  %4690 = vmatpush3.msra.mxu1 %v5380_v57  ;;  %v5631_v57 = vsub.f32 %v65_v51, %v5613_v54  ;;  %v2617_v18 = vand.u32 4294901760, %v5700_v11 }
  0x78   :  { %4687 = vmatmul.mubr.f32.vlgmr.msra.gmra.mxu0 %v5239_v12  ;;  %4691 = vmatprep.subr.mxu1 %v5176_v0  ;;  %v5713_v15 = vsub.f32 %v71_v8, %v5695_v10 }
  0x79   :  { %4700 = vmatprep.subr.mxu0 %v5176_v0  ;;  %4692 = vmatpush3.msra.mxu1 %v5389_v60  ;;  %v2146_v60 = vand.u32 4294901760, %v5622_v56  ;;  %v2153_v62 = vand.u32 4294901760, %v5631_v57  ;;  %v2618_v23 = vsub.f32 %v5700_v11, %v2617_v18 }
  0x7a   :  { %4701 = vmatpush3.msra.mxu0 %v5482_v20  ;;  %4693 = vmatprep.subr.mxu1 %v5176_v0  ;;  %v2624_v21 = vand.u32 4294901760, %v5713_v15 }
  0x7b   :  { %4702 = vmatprep.subr.mxu0 %v5176_v0  ;;  %4694 = vmatpush3.msra.mxu1 %v5399_v63  ;;  %v2134_v63 = vand.u32 4294901760, %v2133_v59  ;;  %v2147_v1 = vsub.f32 %v5622_v56, %v2146_v60  ;;  %v2154_v3 = vsub.f32 %v5631_v57, %v2153_v62  ;;  %v79_v59 = vld [vmem:[#allocation2 + $0xf0] sm:$0xff] }
  0x7c   :  { %4703 = vmatpush3.msra.mxu0 %v5491_v24  ;;  %4695 = vmatprep.subr.mxu1 %v5176_v0 }
  0x7d   :  { %4704 = vmatprep.subr.mxu0 %v5176_v0  ;;  %4696 = vmatpush3.msra.mxu1 %v5409_v2  ;;  %v2141_v2 = vand.u32 4294901760, %v2140_v61  ;;  %v2148_v4 = vand.u32 4294901760, %v2147_v1  ;;  %v2155_v5 = vand.u32 4294901760, %v2154_v3  ;;  %v78_v61 = vld [vmem:[#allocation2 + $0xe8] sm:$0xff] }
  0x7e   :  { %4697 = vmatprep.mubr.msk.f32.mxu1 %vm5177_vm0, %v5176_v0  ;;  %4705 = vmatpush3.msra.mxu0 %v5501_v27 }
  0x7f   :  { %4698 = vmatmul.mubr.f32.vlgmr.msra.gmra.mxu1 %v5239_v12  ;;  %4706 = vmatprep.subr.mxu0 %v5176_v0 }
  0x80   :  { %4711 = vmatprep.subr.mxu1 %v5176_v0  ;;  %4707 = vmatpush3.msra.mxu0 %v5511_v30 }
  0x81   :  { %4712 = vmatpush3.msra.mxu1 %v1649_v39  ;;  %4708 = vmatprep.mubr.msk.f32.mxu0 %vm5177_vm0, %v5176_v0 }
  0x82   :  { %4713 = vmatprep.subr.mxu1 %v5176_v0  ;;  %4722 = vmatprep.subr.mxu0 %v5176_v0 }
  0x83   :  { %4709 = vmatmul.mubr.f32.vlgmr.msra.gmra.mxu0 %v5269_v29  ;;  %4714 = vmatpush3.msra.mxu1 %v1656_v41  ;;  %v5807_v41 = vand.u32 4294901760, %v74_v37 }
  0x84   :  { %4723 = vmatpush3.msra.mxu0 %v5496_v25  ;;  %4715 = vmatprep.subr.mxu1 %v5176_v0  ;;  %v2625_v25 = vsub.f32 %v5713_v15, %v2624_v21 }
  0x85   :  { %4724 = vmatprep.subr.mxu0 %v5176_v0  ;;  %4716 = vmatpush3.msra.mxu1 %v1663_v43  ;;  %v5817_v43 = vand.u32 4294901760, %v73_v40  ;;  %v5826_v45 = vsub.f32 %v74_v37, %v5807_v41 }
  0x86   :  { %4725 = vmatpush3.msra.mxu0 %v5509_v28  ;;  %4717 = vmatprep.subr.mxu1 %v5176_v0 }
  0x87   :  { %4726 = vmatprep.subr.mxu0 %v5176_v0  ;;  %4718 = vmatpush3.msra.mxu1 %v1670_v44 }
  0x88   :  { %4719 = vmatprep.mubr.msk.f32.mxu1 %vm5177_vm0, %v5176_v0  ;;  %4727 = vmatpush3.msra.mxu0 %v5520_v32 }
  0x89   :  { %4720 = vmatmul.mubr.f32.vlgmr.msra.gmra.mxu1 %v5239_v12  ;;  %4728 = vmatprep.subr.mxu0 %v5176_v0 }
  0x8a   :  { %4733 = vmatprep.subr.mxu1 %v5176_v0  ;;  %4729 = vmatpush3.msra.mxu0 %v5529_v33 }
  0x8b   :  { %4730 = vmatprep.mubr.msk.f32.mxu0 %vm5177_vm0, %v5176_v0  ;;  %4734 = vmatpush3.msra.mxu1 %v5482_v20 }
  0x8c   :  { %4731 = vmatmul.mubr.f32.vlgmr.msra.gmra.mxu0 %v5251_v17  ;;  %4735 = vmatprep.subr.mxu1 %v5176_v0 }
  0x8d   :  { %4744 = vmatprep.subr.mxu0 %v5176_v0  ;;  %4736 = vmatpush3.msra.mxu1 %v5491_v24 }
  0x8e   :  { %4745 = vmatpush3.msra.mxu0 %v1647_v31  ;;  %4737 = vmatprep.subr.mxu1 %v5176_v0 }
  0x8f   :  { %4746 = vmatprep.subr.mxu0 %v5176_v0  ;;  %4738 = vmatpush3.msra.mxu1 %v5501_v27 }
  0x90   :  { %4747 = vmatpush3.msra.mxu0 %v1654_v34  ;;  %4739 = vmatprep.subr.mxu1 %v5176_v0  ;;  %v76_v34 = vld [vmem:[#allocation2 + $0xd8] sm:$0xff] }
  0x91   :  { %4748 = vmatprep.subr.mxu0 %v5176_v0  ;;  %4740 = vmatpush3.msra.mxu1 %v5511_v30  ;;  %v5788_v35 = vand.u32 4294901760, %v76_v34 }
  0x92   :  { %4741 = vmatprep.mubr.msk.f32.mxu1 %vm5177_vm0, %v5176_v0  ;;  %4749 = vmatpush3.msra.mxu0 %v1661_v36  ;;  %v75_v36 = vld [vmem:[#allocation2 + $0xd0] sm:$0xff] }
  0x93   :  { %4742 = vmatmul.mubr.f32.vlgmr.msra.gmra.mxu1 %v5258_v22  ;;  %4750 = vmatprep.subr.mxu0 %v5176_v0  ;;  %v5802_v39 = vsub.f32 %v76_v34, %v5788_v35 }
  0x94   :  { %4755 = vmatprep.subr.mxu1 %v5176_v0  ;;  %4751 = vmatpush3.msra.mxu0 %v1668_v38  ;;  %v5797_v38 = vand.u32 4294901760, %v75_v36 }
  0x95   :  { %4752 = vmatprep.mubr.msk.f32.mxu0 %vm5177_vm0, %v5176_v0  ;;  %4756 = vmatpush3.msra.mxu1 %v5482_v20  ;;  %v5733_v20 = vsub.f32 %v69_v13, %v5715_v16  ;;  %v3102_v44 = vand.u32 4294901760, %v5802_v39 }
  0x96   :  { %4753 = vmatmul.mubr.f32.vlgmr.msra.gmra.mxu0 %v5239_v12  ;;  %4757 = vmatprep.subr.mxu1 %v5176_v0  ;;  %v5815_v42 = vsub.f32 %v75_v36, %v5797_v38 }
  0x97   :  { %4766 = vmatprep.subr.mxu0 %v5176_v0  ;;  %4758 = vmatpush3.msra.mxu1 %v5491_v24  ;;  %v2631_v24 = vand.u32 4294901760, %v5724_v19  ;;  %v2638_v26 = vand.u32 4294901760, %v5733_v20  ;;  %v3103_v48 = vsub.f32 %v5802_v39, %v3102_v44 }
  0x98   :  { %4767 = vmatpush3.msra.mxu0 %v5584_v46  ;;  %4759 = vmatprep.subr.mxu1 %v5176_v0  ;;  %v3109_v47 = vand.u32 4294901760, %v5815_v42 }
  0x99   :  { %4768 = vmatprep.subr.mxu0 %v5176_v0  ;;  %4760 = vmatpush3.msra.mxu1 %v5501_v27  ;;  %v2619_v27 = vand.u32 4294901760, %v2618_v23  ;;  %v2632_v28 = vsub.f32 %v5724_v19, %v2631_v24  ;;  %v2639_v31 = vsub.f32 %v5733_v20, %v2638_v26 }
  0x9a   :  { %4769 = vmatpush3.msra.mxu0 %v5593_v49  ;;  %4761 = vmatprep.subr.mxu1 %v5176_v0 }
  0x9b   :  { %4770 = vmatprep.subr.mxu0 %v5176_v0  ;;  %4762 = vmatpush3.msra.mxu1 %v5511_v30  ;;  %v2626_v30 = vand.u32 4294901760, %v2625_v25  ;;  %v2633_v32 = vand.u32 4294901760, %v2632_v28  ;;  %v2640_v33 = vand.u32 4294901760, %v2639_v31 }
  0x9c   :  { %4763 = vmatprep.mubr.msk.f32.mxu1 %vm5177_vm0, %v5176_v0  ;;  %4771 = vmatpush3.msra.mxu0 %v5603_v52 }
  0x9d   :  { %4764 = vmatmul.mubr.f32.vlgmr.msra.gmra.mxu1 %v5239_v12  ;;  %4772 = vmatprep.subr.mxu0 %v5176_v0 }
  0x9e   :  { %4777 = vmatprep.subr.mxu1 %v5176_v0  ;;  %4773 = vmatpush3.msra.mxu0 %v5613_v54 }
  0x9f   :  { %4778 = vmatpush3.msra.mxu1 %v2134_v63  ;;  %4774 = vmatprep.mubr.msk.f32.mxu0 %vm5177_vm0, %v5176_v0  ;;  %v77_v63 = vld [vmem:[#allocation2 + $0xe0] sm:$0xff] }
  0xa0   :  { %4779 = vmatprep.subr.mxu1 %v5176_v0  ;;  %4788 = vmatprep.subr.mxu0 %v5176_v0 }
  0xa1   :  { %4775 = vmatmul.mubr.f32.vlgmr.msra.gmra.mxu0 %v5269_v29  ;;  %4780 = vmatpush3.msra.mxu1 %v2141_v2  ;;  %v5904_v2 = vand.u32 4294901760, %v78_v61 }
  0xa2   :  { %4789 = vmatpush3.msra.mxu0 %v5598_v50  ;;  %4781 = vmatprep.subr.mxu1 %v5176_v0  ;;  %v3110_v50 = vsub.f32 %v5815_v42, %v3109_v47 }
  0xa3   :  { %4790 = vmatprep.subr.mxu0 %v5176_v0  ;;  %4782 = vmatpush3.msra.mxu1 %v2148_v4  ;;  %v5914_v4 = vand.u32 4294901760, %v77_v63 }
  0xa4   :  { %4791 = vmatpush3.msra.mxu0 %v5611_v53  ;;  %4783 = vmatprep.subr.mxu1 %v5176_v0 }
  0xa5   :  { %4792 = vmatprep.subr.mxu0 %v5176_v0  ;;  %4784 = vmatpush3.msra.mxu1 %v2155_v5 }
  0xa6   :  { %4785 = vmatprep.mubr.msk.f32.mxu1 %vm5177_vm0, %v5176_v0  ;;  %4793 = vmatpush3.msra.mxu0 %v5622_v56 }
  0xa7   :  { %4786 = vmatmul.mubr.f32.vlgmr.msra.gmra.mxu1 %v5239_v12  ;;  %4794 = vmatprep.subr.mxu0 %v5176_v0 }
  0xa8   :  { %4799 = vmatprep.subr.mxu1 %v5176_v0  ;;  %4795 = vmatpush3.msra.mxu0 %v5631_v57 }
  0xa9   :  { %4796 = vmatprep.mubr.msk.f32.mxu0 %vm5177_vm0, %v5176_v0  ;;  %4800 = vmatpush3.msra.mxu1 %v5584_v46 }
  0xaa   :  { %4797 = vmatmul.mubr.f32.vlgmr.msra.gmra.mxu0 %v5251_v17  ;;  %4801 = vmatprep.subr.mxu1 %v5176_v0 }
  0xab   :  { %4810 = vmatprep.subr.mxu0 %v5176_v0  ;;  %4802 = vmatpush3.msra.mxu1 %v5593_v49 }
  0xac   :  { %4811 = vmatpush3.msra.mxu0 %v2132_v55  ;;  %4803 = vmatprep.subr.mxu1 %v5176_v0 }
  0xad   :  { %4812 = vmatprep.subr.mxu0 %v5176_v0  ;;  %4804 = vmatpush3.msra.mxu1 %v5603_v52 }
  0xae   :  { %4813 = vmatpush3.msra.mxu0 %v2139_v58  ;;  %4805 = vmatprep.subr.mxu1 %v5176_v0  ;;  %v80_v58 = vld [vmem:[#allocation2 + $0xf8] sm:$0xff] }
  0xaf   :  { %4814 = vmatprep.subr.mxu0 %v5176_v0  ;;  %4806 = vmatpush3.msra.mxu1 %v5613_v54 }
  0xb0   :  { %4807 = vmatprep.mubr.msk.f32.mxu1 %vm5177_vm0, %v5176_v0  ;;  %4815 = vmatpush3.msra.mxu0 %v2146_v60  ;;  %v5887_v60 = vand.u32 4294901760, %v80_v58 }
  0xb1   :  { %4808 = vmatmul.mubr.f32.vlgmr.msra.gmra.mxu1 %v5258_v22  ;;  %4816 = vmatprep.subr.mxu0 %v5176_v0 }
  0xb2   :  { %4821 = vmatprep.subr.mxu1 %v5176_v0  ;;  %4817 = vmatpush3.msra.mxu0 %v2153_v62  ;;  %v5894_v62 = vand.u32 4294901760, %v79_v59  ;;  %v5902_v1 = vsub.f32 %v80_v58, %v5887_v60 }
  0xb3   :  { %4818 = vmatprep.mubr.msk.f32.mxu0 %vm5177_vm0, %v5176_v0  ;;  %4822 = vmatpush3.msra.mxu1 %v5584_v46  ;;  %v5835_v46 = vsub.f32 %v73_v40, %v5817_v43 }
  0xb4   :  { %4819 = vmatmul.mubr.f32.vlgmr.msra.gmra.mxu0 %v5239_v12  ;;  %4823 = vmatprep.subr.mxu1 %v5176_v0  ;;  %v5912_v3 = vsub.f32 %v79_v59, %v5894_v62  ;;  %v3587_v6 = vand.u32 4294901760, %v5902_v1 }
  0xb5   :  { %4832 = vmatprep.subr.mxu0 %v5176_v0  ;;  %4824 = vmatpush3.msra.mxu1 %v5593_v49  ;;  %v3116_v49 = vand.u32 4294901760, %v5826_v45  ;;  %v3123_v51 = vand.u32 4294901760, %v5835_v46 }
  0xb6   :  { %4833 = vmatpush3.msra.mxu0 %v5686_v7  ;;  %4825 = vmatprep.subr.mxu1 %v5176_v0  ;;  %v3594_v9 = vand.u32 4294901760, %v5912_v3  ;;  %v3588_v13 = vsub.f32 %v5902_v1, %v3587_v6 }
  0xb7   :  { %4834 = vmatprep.subr.mxu0 %v5176_v0  ;;  %4826 = vmatpush3.msra.mxu1 %v5603_v52  ;;  %v3104_v52 = vand.u32 4294901760, %v3103_v48  ;;  %v3117_v53 = vsub.f32 %v5826_v45, %v3116_v49  ;;  %v3124_v55 = vsub.f32 %v5835_v46, %v3123_v51 }
  0xb8   :  { %4835 = vmatpush3.msra.mxu0 %v5695_v10  ;;  %4827 = vmatprep.subr.mxu1 %v5176_v0 }
  0xb9   :  { %4836 = vmatprep.subr.mxu0 %v5176_v0  ;;  %4828 = vmatpush3.msra.mxu1 %v5613_v54  ;;  %v3111_v54 = vand.u32 4294901760, %v3110_v50  ;;  %v3118_v56 = vand.u32 4294901760, %v3117_v53  ;;  %v3125_v57 = vand.u32 4294901760, %v3124_v55 }
  0xba   :  { %4829 = vmatprep.mubr.msk.f32.mxu1 %vm5177_vm0, %v5176_v0  ;;  %4837 = vmatpush3.msra.mxu0 %v5705_v14 }
  0xbb   :  { %4830 = vmatmul.mubr.f32.vlgmr.msra.gmra.mxu1 %v5239_v12  ;;  %4838 = vmatprep.subr.mxu0 %v5176_v0 }
  0xbc   :  { %4843 = vmatprep.subr.mxu1 %v5176_v0  ;;  %4839 = vmatpush3.msra.mxu0 %v5715_v16 }
  0xbd   :  { %4844 = vmatpush3.msra.mxu1 %v2619_v27  ;;  %4840 = vmatprep.mubr.msk.f32.mxu0 %vm5177_vm0, %v5176_v0 }
  0xbe   :  { %4845 = vmatprep.subr.mxu1 %v5176_v0  ;;  %4854 = vmatprep.subr.mxu0 %v5176_v0 }
  0xbf   :  { %4841 = vmatmul.mubr.f32.vlgmr.msra.gmra.mxu0 %v5269_v29  ;;  %4846 = vmatpush3.msra.mxu1 %v2626_v30 }
  0xc0   :  { %4855 = vmatpush3.msra.mxu0 %v5700_v11  ;;  %4847 = vmatprep.subr.mxu1 %v5176_v0 }
  0xc1   :  { %4856 = vmatprep.subr.mxu0 %v5176_v0  ;;  %4848 = vmatpush3.msra.mxu1 %v2633_v32 }
  0xc2   :  { %4857 = vmatpush3.msra.mxu0 %v5713_v15  ;;  %4849 = vmatprep.subr.mxu1 %v5176_v0 }
  0xc3   :  { %4858 = vmatprep.subr.mxu0 %v5176_v0  ;;  %4850 = vmatpush3.msra.mxu1 %v2640_v33 }
  0xc4   :  { %4851 = vmatprep.mubr.msk.f32.mxu1 %vm5177_vm0, %v5176_v0  ;;  %4859 = vmatpush3.msra.mxu0 %v5724_v19 }
  0xc5   :  { %4852 = vmatmul.mubr.f32.vlgmr.msra.gmra.mxu1 %v5239_v12  ;;  %4860 = vmatprep.subr.mxu0 %v5176_v0 }
  0xc6   :  { %4865 = vmatprep.subr.mxu1 %v5176_v0  ;;  %4861 = vmatpush3.msra.mxu0 %v5733_v20  ;;  %v3589_v20 = vand.u32 4294901760, %v3588_v13 }
  0xc7   :  { %4862 = vmatprep.mubr.msk.f32.mxu0 %vm5177_vm0, %v5176_v0  ;;  %4866 = vmatpush3.msra.mxu1 %v5686_v7 }
  0xc8   :  { %4863 = vmatmul.mubr.f32.vlgmr.msra.gmra.mxu0 %v5251_v17  ;;  %4867 = vmatprep.subr.mxu1 %v5176_v0 }
  0xc9   :  { %4876 = vmatprep.subr.mxu0 %v5176_v0  ;;  %4868 = vmatpush3.msra.mxu1 %v5695_v10 }
  0xca   :  { %4877 = vmatpush3.msra.mxu0 %v2617_v18  ;;  %4869 = vmatprep.subr.mxu1 %v5176_v0 }
  0xcb   :  { %4878 = vmatprep.subr.mxu0 %v5176_v0  ;;  %4870 = vmatpush3.msra.mxu1 %v5705_v14 }
  0xcc   :  { %4879 = vmatpush3.msra.mxu0 %v2624_v21  ;;  %4871 = vmatprep.subr.mxu1 %v5176_v0 }
  0xcd   :  { %4880 = vmatprep.subr.mxu0 %v5176_v0  ;;  %4872 = vmatpush3.msra.mxu1 %v5715_v16 }
  0xce   :  { %4873 = vmatprep.mubr.msk.f32.mxu1 %vm5177_vm0, %v5176_v0  ;;  %4881 = vmatpush3.msra.mxu0 %v2631_v24 }
  0xcf   :  { %4874 = vmatmul.mubr.f32.vlgmr.msra.gmra.mxu1 %v5258_v22  ;;  %4882 = vmatprep.subr.mxu0 %v5176_v0 }
  0xd0   :  { %4887 = vmatprep.subr.mxu1 %v5176_v0  ;;  %4883 = vmatpush3.msra.mxu0 %v2638_v26 }
  0xd1   :  { %4884 = vmatprep.mubr.msk.f32.mxu0 %vm5177_vm0, %v5176_v0  ;;  %4888 = vmatpush3.msra.mxu1 %v5686_v7  ;;  %v5925_v7 = vsub.f32 %v78_v61, %v5904_v2 }
  0xd2   :  { %4885 = vmatmul.mubr.f32.vlgmr.msra.gmra.mxu0 %v5239_v12  ;;  %4889 = vmatprep.subr.mxu1 %v5176_v0 }
  0xd3   :  { %4898 = vmatprep.subr.mxu0 %v5176_v0  ;;  %4890 = vmatpush3.msra.mxu1 %v5695_v10  ;;  %v5934_v10 = vsub.f32 %v77_v63, %v5914_v4 }
  0xd4   :  { %4899 = vmatpush3.msra.mxu0 %v5788_v35  ;;  %4891 = vmatprep.subr.mxu1 %v5176_v0 }
  0xd5   :  { %4900 = vmatprep.subr.mxu0 %v5176_v0  ;;  %4892 = vmatpush3.msra.mxu1 %v5705_v14  ;;  %v3601_v14 = vand.u32 4294901760, %v5925_v7  ;;  %v3608_v18 = vand.u32 4294901760, %v5934_v10 }
  0xd6   :  { %4901 = vmatpush3.msra.mxu0 %v5797_v38  ;;  %4893 = vmatprep.subr.mxu1 %v5176_v0 }
  0xd7   :  { %4902 = vmatprep.subr.mxu0 %v5176_v0  ;;  %4894 = vmatpush3.msra.mxu1 %v5715_v16  ;;  %v3595_v16 = vsub.f32 %v5912_v3, %v3594_v9  ;;  %v3602_v21 = vsub.f32 %v5925_v7, %v3601_v14  ;;  %v3609_v25 = vsub.f32 %v5934_v10, %v3608_v18 }
  0xd8   :  { %4895 = vmatprep.mubr.msk.f32.mxu1 %vm5177_vm0, %v5176_v0  ;;  %4903 = vmatpush3.msra.mxu0 %v5807_v41 }
  0xd9   :  { %4896 = vmatmul.mubr.f32.vlgmr.msra.gmra.mxu1 %v5239_v12  ;;  %4904 = vmatprep.subr.mxu0 %v5176_v0  ;;  %v3596_v24 = vand.u32 4294901760, %v3595_v16  ;;  %v3603_v26 = vand.u32 4294901760, %v3602_v21  ;;  %v3610_v28 = vand.u32 4294901760, %v3609_v25 }
  0xda   :  { %4909 = vmatprep.subr.mxu1 %v5176_v0  ;;  %4905 = vmatpush3.msra.mxu0 %v5817_v43 }
  0xdb   :  { %4910 = vmatpush3.msra.mxu1 %v3104_v52  ;;  %4906 = vmatprep.mubr.msk.f32.mxu0 %vm5177_vm0, %v5176_v0 }
  0xdc   :  { %4911 = vmatprep.subr.mxu1 %v5176_v0  ;;  %4920 = vmatprep.subr.mxu0 %v5176_v0 }
  0xdd   :  { %4907 = vmatmul.mubr.f32.vlgmr.msra.gmra.mxu0 %v5269_v29  ;;  %4912 = vmatpush3.msra.mxu1 %v3111_v54 }
  0xde   :  { %4921 = vmatpush3.msra.mxu0 %v5802_v39  ;;  %4913 = vmatprep.subr.mxu1 %v5176_v0 }
  0xdf   :  { %4922 = vmatprep.subr.mxu0 %v5176_v0  ;;  %4914 = vmatpush3.msra.mxu1 %v3118_v56 }
  0xe0   :  { %4923 = vmatpush3.msra.mxu0 %v5815_v42  ;;  %4915 = vmatprep.subr.mxu1 %v5176_v0 }
  0xe1   :  { %4924 = vmatprep.subr.mxu0 %v5176_v0  ;;  %4916 = vmatpush3.msra.mxu1 %v3125_v57 }
  0xe2   :  { %4917 = vmatprep.mubr.msk.f32.mxu1 %vm5177_vm0, %v5176_v0  ;;  %4925 = vmatpush3.msra.mxu0 %v5826_v45 }
  0xe3   :  { %4918 = vmatmul.mubr.f32.vlgmr.msra.gmra.mxu1 %v5239_v12  ;;  %4926 = vmatprep.subr.mxu0 %v5176_v0 }
  0xe4   :  { %4931 = vmatprep.subr.mxu1 %v5176_v0  ;;  %4927 = vmatpush3.msra.mxu0 %v5835_v46 }
  0xe5   :  { %4928 = vmatprep.mubr.msk.f32.mxu0 %vm5177_vm0, %v5176_v0  ;;  %4932 = vmatpush3.msra.mxu1 %v5788_v35 }
  0xe6   :  { %4929 = vmatmul.mubr.f32.vlgmr.msra.gmra.mxu0 %v5251_v17  ;;  %4933 = vmatprep.subr.mxu1 %v5176_v0 }
  0xe7   :  { %4942 = vmatprep.subr.mxu0 %v5176_v0  ;;  %4934 = vmatpush3.msra.mxu1 %v5797_v38 }
  0xe8   :  { %4943 = vmatpush3.msra.mxu0 %v3102_v44  ;;  %4935 = vmatprep.subr.mxu1 %v5176_v0 }
  0xe9   :  { %4944 = vmatprep.subr.mxu0 %v5176_v0  ;;  %4936 = vmatpush3.msra.mxu1 %v5807_v41 }
  0xea   :  { %4945 = vmatpush3.msra.mxu0 %v3109_v47  ;;  %v5916_v5 = vpop.f32.mrf.mxu0  ;;  %4937 = vmatprep.subr.mxu1 %v5176_v0 }
  0xeb   :  { %4946 = vmatprep.subr.mxu0 %v5176_v0  ;;  %4938 = vmatpush3.msra.mxu1 %v5817_v43 }
  0xec   :  { %4939 = vmatprep.mubr.msk.f32.mxu1 %vm5177_vm0, %v5176_v0  ;;  %v4512_v8 = vpop.f32.mrf.mxu0  ;;  %4947 = vmatpush3.msra.mxu0 %v3116_v49 }
  0xed   :  { %4940 = vmatmul.mubr.f32.vlgmr.msra.gmra.mxu1 %v5258_v22  ;;  %4948 = vmatprep.subr.mxu0 %v5176_v0 }
  0xee   :  { %4953 = vmatprep.subr.mxu1 %v5176_v0  ;;  %4949 = vmatpush3.msra.mxu0 %v3123_v51  ;;  %v252_v11 = vpop.f32.mrf.mxu1 }
  0xef   :  { %4950 = vmatprep.mubr.msk.f32.mxu0 %vm5177_vm0, %v5176_v0  ;;  %4954 = vmatpush3.msra.mxu1 %v5788_v35  ;;  %v253_v33 = vadd.f32 %v252_v11, %v5916_v5 }
  0xf0   :  { %4951 = vmatmul.mubr.f32.vlgmr.msra.gmra.mxu0 %v5239_v12  ;;  %4955 = vmatprep.subr.mxu1 %v5176_v0  ;;  %v4523_v15 = vpop.f32.mrf.mxu1 }
  0xf1   :  { %4961 = vmatprep.mubr.msk.f32.mxu1 %vm5177_vm0, %v5176_v0  ;;  %4956 = vmatpush3.msra.mxu1 %v5797_v38 }
  0xf2   :  { %4964 = vmatprep.subr.mxu0 %v5176_v0  ;;  %v332_v19 = vpop.f32.mrf.mxu0  ;;  %4957 = vmatprep.subr.mxu1 %v5176_v0 }
  0xf3   :  { %4965 = vmatpush3.msra.mxu0 %v5887_v60  ;;  %4958 = vmatpush3.msra.mxu1 %v5807_v41 }
  0xf4   :  { %4966 = vmatprep.subr.mxu0 %v5176_v0  ;;  %v4534_v23 = vpop.f32.mrf.mxu0  ;;  %4959 = vmatprep.subr.mxu1 %v5176_v0 }
  0xf5   :  { %4967 = vmatpush3.msra.mxu0 %v5894_v62  ;;  %4960 = vmatpush3.msra.mxu1 %v5817_v43 }
  0xf6   :  { %4968 = vmatprep.subr.mxu0 %v5176_v0  ;;  %4962 = vmatmul.mubr.f32.vlgmr.msra.gmra.mxu1 %v5239_v12 }
  0xf7   :  { %4975 = vmatprep.subr.mxu1 %v5176_v0  ;;  %4969 = vmatpush3.msra.mxu0 %v5904_v2 }
  0xf8   :  { %4976 = vmatpush3.msra.mxu1 %v3589_v20  ;;  %4970 = vmatprep.subr.mxu0 %v5176_v0 }
  0xf9   :  { %4977 = vmatprep.subr.mxu1 %v5176_v0  ;;  %v409_v27 = vpop.f32.mrf.mxu1  ;;  %4971 = vmatpush3.msra.mxu0 %v5914_v4 }
  0xfa   :  { %4978 = vmatpush3.msra.mxu1 %v3596_v24  ;;  %4972 = vmatprep.mubr.msk.f32.mxu0 %vm5177_vm0, %v5176_v0 }
  0xfb   :  { %4979 = vmatprep.subr.mxu1 %v5176_v0  ;;  %v4545_v30 = vpop.f32.mrf.mxu1  ;;  %4986 = vmatprep.subr.mxu0 %v5176_v0 }
  0xfc   :  { %4980 = vmatpush3.msra.mxu1 %v3603_v26  ;;  %v492_v31 = vpop.f32.mrf.mxu0  ;;  %4973 = vmatmul.mubr.f32.vlgmr.msra.gmra.mxu0 %v5269_v29  ;;  %v333_v29 = vadd.f32 %v332_v19, %v253_v33 }
  0xfd   :  { %4981 = vmatprep.subr.mxu1 %v5176_v0  ;;  %4987 = vmatpush3.msra.mxu0 %v5902_v1 }
  0xfe   :  { %4982 = vmatpush3.msra.mxu1 %v3610_v28  ;;  %v4556_v32 = vpop.f32.mrf.mxu0  ;;  %4983 = vmatprep.mubr.msk.f32.mxu1 %vm5177_vm0, %v5176_v0  ;;  %v410_v35 = vadd.f32 %v409_v27, %v333_v29 }
  0xff   :  { %4988 = vmatprep.subr.mxu0 %v5176_v0  ;;  %4997 = vmatprep.subr.mxu1 %v5176_v0 }
 0x100   :  { %4984 = vmatmul.mubr.f32.vlgmr.msra.gmra.mxu1 %v5239_v12  ;;  %4989 = vmatpush3.msra.mxu0 %v5912_v3  ;;  %v493_v38 = vadd.f32 %v492_v31, %v410_v35 }
 0x101   :  { %4998 = vmatpush3.msra.mxu1 %v5887_v60  ;;  %4990 = vmatprep.subr.mxu0 %v5176_v0 }
 0x102   :  { %4999 = vmatprep.subr.mxu1 %v5176_v0  ;;  %4991 = vmatpush3.msra.mxu0 %v5925_v7 }
 0x103   :  { %5000 = vmatpush3.msra.mxu1 %v5894_v62  ;;  %v567_v34 = vpop.f32.mrf.mxu1  ;;  %4992 = vmatprep.subr.mxu0 %v5176_v0 }
 0x104   :  { %5001 = vmatprep.subr.mxu1 %v5176_v0  ;;  %4993 = vmatpush3.msra.mxu0 %v5934_v10 }
 0x105   :  { %5002 = vmatpush3.msra.mxu1 %v5904_v2  ;;  %v4567_v36 = vpop.f32.mrf.mxu1  ;;  %4994 = vmatprep.mubr.msk.f32.mxu0 %vm5177_vm0, %v5176_v0 }
 0x106   :  { %5003 = vmatprep.subr.mxu1 %v5176_v0  ;;  %5008 = vmatprep.subr.mxu0 %v5176_v0 }
 0x107   :  { %4995 = vmatmul.mubr.f32.vlgmr.msra.gmra.mxu0 %v5251_v17  ;;  %v646_v37 = vpop.f32.mrf.mxu0  ;;  %5004 = vmatpush3.msra.mxu1 %v5914_v4  ;;  %v6014_v17 = vadd.f32 %v567_v34, %v493_v38 }
 0x108   :  { %5009 = vmatpush3.msra.mxu0 %v3587_v6  ;;  %5005 = vmatprep.mubr.msk.f32.mxu1 %vm5177_vm0, %v5176_v0 }
 0x109   :  { %5010 = vmatprep.subr.mxu0 %v5176_v0  ;;  %v4578_v39 = vpop.f32.mrf.mxu0  ;;  %5019 = vmatprep.subr.mxu1 %v5176_v0 }
 0x10a   :  { %5006 = vmatmul.mubr.f32.vlgmr.msra.gmra.mxu1 %v5258_v22  ;;  %5011 = vmatpush3.msra.mxu0 %v3594_v9  ;;  %v3967_v22 = vsel %vm3966_vm2, %v6014_v17, -inf }
 0x10b   :  { %5020 = vmatpush3.msra.mxu1 %v5887_v60  ;;  %5012 = vmatprep.subr.mxu0 %v5176_v0 }
 0x10c   :  { %5021 = vmatprep.subr.mxu1 %v5176_v0  ;;  %5013 = vmatpush3.msra.mxu0 %v3601_v14 }
 0x10d   :  { %5022 = vmatpush3.msra.mxu1 %v5894_v62  ;;  %v737_v40 = vpop.f32.mrf.mxu1  ;;  %5014 = vmatprep.subr.mxu0 %v5176_v0 }
 0x10e   :  { %5023 = vmatprep.subr.mxu1 %v5176_v0  ;;  %5015 = vmatpush3.msra.mxu0 %v3608_v18  ;;  %v738_v44 = vadd.f32 %v737_v40, %v646_v37 }
 0x10f   :  { %5016 = vmatprep.mubr.msk.f32.mxu0 %vm5177_vm0, %v5176_v0  ;;  %v4589_v41 = vpop.f32.mrf.mxu1  ;;  %5024 = vmatpush3.msra.mxu1 %v5904_v2 }
 0x110   :  { %5017 = vmatmul.mubr.f32.vlgmr.msra.gmra.mxu0 %v5239_v12  ;;  %v817_v42 = vpop.f32.mrf.mxu0  ;;  %5025 = vmatprep.subr.mxu1 %v5176_v0 }
 0x111   :  { %5027 = vmatprep.mubr.msk.f32.mxu1 %vm5177_vm0, %v5176_v0  ;;  %5026 = vmatpush3.msra.mxu1 %v5914_v4  ;;  %v818_v47 = vadd.f32 %v817_v42, %v738_v44 }
 0x112   :  { %3968 = vmax.xlane.f32.xlu0 %v3967_v22  ;;  %v4600_v43 = vpop.f32.mrf.mxu0  ;;  %5028 = vmatmul.mubr.f32.vlgmr.msra.gmra.mxu1 %v5239_v12 }
 0x117   :  { %v894_v45 = vpop.f32.mrf.mxu1 }
 0x118   :  { %v895_v49 = vadd.f32 %v894_v45, %v818_v47 }
 0x119   :  { %v4611_v46 = vpop.f32.mrf.mxu1 }
 0x11a   :  { %v977_v48 = vpop.f32.mrf.mxu0 }
 0x11b   :  { %v978_v51 = vadd.f32 %v977_v48, %v895_v49 }
 0x11c   :  { %v4622_v50 = vpop.f32.mrf.mxu0 }
 0x121   :  { %v1052_v52 = vpop.f32.mrf.mxu1 }
 0x122   :  { %v6036_v53 = vadd.f32 %v1052_v52, %v978_v51 }
 0x123   :  { %v4633_v54 = vpop.f32.mrf.mxu1 }
 0x124   :  { %v3970_v0 = vsel %vm3966_vm2, %v6036_v53, -inf }
 0x125   :  { %3971 = vmax.xlane.f32.xlu0 %v3970_v0  ;;  %v1131_v55 = vpop.f32.mrf.mxu0 }
 0x127   :  { %v4644_v56 = vpop.f32.mrf.mxu0 }
 0x12b   :  { %v1222_v57 = vpop.f32.mrf.mxu1 }
 0x12c   :  { %v1223_v60 = vadd.f32 %v1222_v57, %v1131_v55 }
 0x12d   :  { %v4655_v12 = vpop.f32.mrf.mxu1 }
 0x12e   :  { %v1302_v58 = vpop.f32.mrf.mxu0 }
 0x12f   :  { %v1303_v63 = vadd.f32 %v1302_v58, %v1223_v60 }
 0x130   :  { %v4666_v59 = vpop.f32.mrf.mxu0 }
 0x135   :  { %v1379_v61 = vpop.f32.mrf.mxu1 }
 0x136   :  { %v1380_v2 = vadd.f32 %v1379_v61, %v1303_v63 }
 0x137   :  { %v4677_v62 = vpop.f32.mrf.mxu1 }
 0x138   :  { %v1462_v1 = vpop.f32.mrf.mxu0 }
 0x139   :  { %v1463_v4 = vadd.f32 %v1462_v1, %v1380_v2 }
 0x13a   :  { %v4688_v3 = vpop.f32.mrf.mxu0 }
 0x13f   :  { %v1537_v5 = vpop.f32.mrf.mxu1 }
 0x140   :  { %v6040_v6 = vadd.f32 %v1537_v5, %v1463_v4 }
 0x141   :  { %v4699_v7 = vpop.f32.mrf.mxu1 }
 0x142   :  { %v3973_v8 = vsel %vm3966_vm2, %v6040_v6, -inf }
 0x143   :  { %3974 = vmax.xlane.f32.xlu1 %v3973_v8  ;;  %v1616_v9 = vpop.f32.mrf.mxu0  ;;  %v4253_v8 = vld [vmem:[%s6140_s4] ss:$0 sm:$0xff] }
 0x145   :  { %v4710_v10 = vpop.f32.mrf.mxu0 }
 0x149   :  { %v1707_v11 = vpop.f32.mrf.mxu1 }
 0x14a   :  { %v1708_v16 = vadd.f32 %v1707_v11, %v1616_v9 }
 0x14b   :  { %v4721_v13 = vpop.f32.mrf.mxu1 }
 0x14c   :  { %v1787_v14 = vpop.f32.mrf.mxu0 }
 0x14d   :  { %v1788_v20 = vadd.f32 %v1787_v14, %v1708_v16 }
 0x14e   :  { %v4732_v15 = vpop.f32.mrf.mxu0 }
 0x153   :  { %v1864_v18 = vpop.f32.mrf.mxu1 }
 0x154   :  { %v1865_v23 = vadd.f32 %v1864_v18, %v1788_v20 }
 0x155   :  { %v4743_v19 = vpop.f32.mrf.mxu1 }
 0x156   :  { %v1947_v21 = vpop.f32.mrf.mxu0 }
 0x157   :  { %v1948_v25 = vadd.f32 %v1947_v21, %v1865_v23 }
 0x158   :  { %v4754_v24 = vpop.f32.mrf.mxu0 }
 0x15d   :  { %v2022_v26 = vpop.f32.mrf.mxu1 }
 0x15e   :  { %v6044_v27 = vadd.f32 %v2022_v26, %v1948_v25 }
 0x15f   :  { %v4765_v28 = vpop.f32.mrf.mxu1 }
 0x160   :  { %v3976_v30 = vsel %vm3966_vm2, %v6044_v27, -inf }
 0x161   :  { %3977 = vmax.xlane.f32.xlu1 %v3976_v30  ;;  %v2101_v31 = vpop.f32.mrf.mxu0 }
 0x163   :  { %v4776_v32 = vpop.f32.mrf.mxu0 }
 0x167   :  { %v2192_v33 = vpop.f32.mrf.mxu1 }
 0x168   :  { %v2193_v36 = vadd.f32 %v2192_v33, %v2101_v31 }
 0x169   :  { %v4787_v29 = vpop.f32.mrf.mxu1 }
 0x16a   :  { %v2272_v34 = vpop.f32.mrf.mxu0 }
 0x16b   :  { %v2273_v39 = vadd.f32 %v2272_v34, %v2193_v36 }
 0x16c   :  { %v4798_v35 = vpop.f32.mrf.mxu0 }
 0x171   :  { %v2349_v37 = vpop.f32.mrf.mxu1 }
 0x172   :  { %v2350_v22 = vadd.f32 %v2349_v37, %v2273_v39 }
 0x173   :  { %v4809_v38 = vpop.f32.mrf.mxu1 }
 0x174   :  { %v2432_v40 = vpop.f32.mrf.mxu0 }
 0x175   :  { %v2433_v42 = vadd.f32 %v2432_v40, %v2350_v22 }
 0x176   :  { %v4820_v41 = vpop.f32.mrf.mxu0 }
 0x17b   :  { %v2507_v43 = vpop.f32.mrf.mxu1 }
 0x17c   :  { %v6048_v44 = vadd.f32 %v2507_v43, %v2433_v42 }
 0x17d   :  { %v4831_v45 = vpop.f32.mrf.mxu1 }
 0x17e   :  { %v3979_v46 = vsel %vm3966_vm2, %v6048_v44, -inf }
 0x17f   :  { %3980 = vmax.xlane.f32.xlu0 %v3979_v46  ;;  %v2586_v47 = vpop.f32.mrf.mxu0 }
 0x181   :  { %v4842_v48 = vpop.f32.mrf.mxu0 }
 0x185   :  { %v2677_v49 = vpop.f32.mrf.mxu1 }
 0x186   :  { %v2678_v54 = vadd.f32 %v2677_v49, %v2586_v47 }
 0x187   :  { %v4853_v50 = vpop.f32.mrf.mxu1 }
 0x188   :  { %v2757_v51 = vpop.f32.mrf.mxu0 }
 0x189   :  { %v2758_v56 = vadd.f32 %v2757_v51, %v2678_v54 }
 0x18a   :  { %v4864_v52 = vpop.f32.mrf.mxu0 }
 0x18f   :  { %v2834_v0 = vpop.f32.mrf.mxu1 }
 0x190   :  { %v2835_v12 = vadd.f32 %v2834_v0, %v2758_v56 }
 0x191   :  { %v4875_v55 = vpop.f32.mrf.mxu1 }
 0x192   :  { %v2917_v57 = vpop.f32.mrf.mxu0 }
 0x193   :  { %v2918_v59 = vadd.f32 %v2917_v57, %v2835_v12 }
 0x194   :  { %v4886_v58 = vpop.f32.mrf.mxu0 }
 0x199   :  { %v2992_v60 = vpop.f32.mrf.mxu1 }
 0x19a   :  { %v6052_v61 = vadd.f32 %v2992_v60, %v2918_v59 }
 0x19b   :  { %v4897_v62 = vpop.f32.mrf.mxu1  ;;  %v6059_v19 = vpop.xlane.xlu0 %3968 }
 0x19c   :  { %v3982_v63 = vsel %vm3966_vm2, %v6052_v61, -inf  ;;  %v4158_v23 = vsub.f32 %v6014_v17, %v6059_v19  ;;  %v4252_v17 = vld [vmem:[%s6139_s3] ss:$0 sm:$0xff] }
 0x19d   :  { %3983 = vmax.xlane.f32.xlu1 %v3982_v63  ;;  %v3071_v1 = vpop.f32.mrf.mxu0 }
 0x19e   :  { %v4166_v26 = vmul.f32 1.442695, %v4158_v23 }
 0x19f   :  { %v4908_v2 = vpop.f32.mrf.mxu0 }
 0x1a0   :  { %5042 = vpow2.f32 %v4166_v26 }
 0x1a3   :  { %v3162_v3 = vpop.f32.mrf.mxu1 }
 0x1a4   :  { %v3163_v9 = vadd.f32 %v3162_v3, %v3071_v1 }
 0x1a5   :  { %v4919_v4 = vpop.f32.mrf.mxu1 }
 0x1a6   :  { %v3242_v5 = vpop.f32.mrf.mxu0 }
 0x1a7   :  { %v3243_v13 = vadd.f32 %v3242_v5, %v3163_v9 }
 0x1a8   :  { %v4930_v7 = vpop.f32.mrf.mxu0 }
 0x1ad   :  { %v3319_v10 = vpop.f32.mrf.mxu1  ;;  %v6067_v39 = vpop.eup %5042 }
 0x1ae   :  { %4016 = vbcast.lane.b32.xlu1 %v4253_v8, 256  ;;  %v3320_v15 = vadd.f32 %v3319_v10, %v3243_v13  ;;  %v4182_v41 = vsel %vm3966_vm2, %v6067_v39, 0.0  ;;  %v3972_v45 = vpop.xlane.xlu0 %3971 }
 0x1af   :  { %v4941_v11 = vpop.f32.mrf.mxu1  ;;  %v4159_v50 = vsub.f32 %v6036_v53, %v3972_v45 }
 0x1b0   :  { %v3402_v14 = vpop.f32.mrf.mxu0 }
 0x1b1   :  { %v3403_v18 = vadd.f32 %v3402_v14, %v3320_v15  ;;  %v4168_v52 = vmul.f32 1.442695, %v4159_v50 }
 0x1b2   :  { %v4952_v16 = vpop.f32.mrf.mxu0 }
 0x1b3   :  { %5044 = vpow2.f32 %v4168_v52 }
 0x1b6   :  { %v3477_v20 = vpop.f32.mrf.mxu1 }
 0x1b7   :  { %v6061_v21 = vadd.f32 %v3477_v20, %v3403_v18 }
 0x1b8   :  { %v4963_v24 = vpop.f32.mrf.mxu1 }
 0x1b9   :  { %v3985_v25 = vsel %vm3966_vm2, %v6061_v21, -inf }
 0x1ba   :  { %3986 = vmax.xlane.f32.xlu0 %v3985_v25 }
 0x1bc   :  { %v3556_v28 = vpop.f32.mrf.mxu0 }
 0x1be   :  { %v4974_v30 = vpop.f32.mrf.mxu0 }
 0x1c0   :  { %v3647_v31 = vpop.f32.mrf.mxu1  ;;  %v6081_v56 = vpop.eup %5044 }
 0x1c1   :  { %v3648_v33 = vadd.f32 %v3647_v31, %v3556_v28  ;;  %v4185_v58 = vsel %vm3966_vm2, %v6081_v56, 0.0 }
 0x1c2   :  { %v4985_v32 = vpop.f32.mrf.mxu1 }
 0x1c7   :  { %v3727_v29 = vpop.f32.mrf.mxu0 }
 0x1c8   :  { %v3728_v34 = vadd.f32 %v3727_v29, %v3648_v33 }
 0x1c9   :  { %v4996_v35 = vpop.f32.mrf.mxu0 }
 0x1ca   :  { %v3804_v36 = vpop.f32.mrf.mxu1 }
 0x1cb   :  { %v3805_v38 = vadd.f32 %v3804_v36, %v3728_v34 }
 0x1cc   :  { %v5007_v37 = vpop.f32.mrf.mxu1  ;;  %v3975_v49 = vpop.xlane.xlu1 %3974 }
 0x1cd   :  { %v4160_v51 = vsub.f32 %v6040_v6, %v3975_v49  ;;  %v5178_v6 = vmov 0  }
 0x1ce   :  { %5041 = vset.pattern.permute.xlu1 %v5178_v6  ;;  %5040 = vset.pattern.permute.xlu0 %v5178_v6 }
 0x1cf   :  { %v4170_v54 = vmul.f32 1.442695, %v4160_v51 }
 0x1d0   :  { %v3887_v40 = vpop.f32.mrf.mxu0  ;;  %3998 = vbcast.lane.b32.xlu0 %v4252_v17, 256 }
 0x1d1   :  { %v3888_v22 = vadd.f32 %v3887_v40, %v3805_v38  ;;  %5046 = vpow2.f32 %v4170_v54 }
 0x1d2   :  { %4183 = vadd.xlane.f32.xlu1 %v4182_v41  ;;  %v5018_v42 = vpop.f32.mrf.mxu0  ;;  %v3962_v43 = vpop.f32.mrf.mxu1 }
 0x1d3   :  { %v6074_v46 = vadd.f32 %v3962_v43, %v3888_v22 }
 0x1d4   :  { %v5029_v47 = vpop.f32.mrf.mxu1 }
 0x1d5   :  { %v3988_v48 = vsel %vm3966_vm2, %v6074_v46, -inf }
 0x1d6   :  { %3989 = vmax.xlane.f32.xlu1 %v3988_v48 }
 0x1de   :  { %v6083_v12 = vpop.eup %5046 }
 0x1df   :  { %v4188_v53 = vsel %vm3966_vm2, %v6083_v12, 0.0 }
 0x1ea   :  { %v3978_v0 = vpop.xlane.xlu1 %3977 }
 0x1eb   :  { %v4161_v55 = vsub.f32 %v6044_v27, %v3978_v0 }
 0x1ed   :  { %v4172_v57 = vmul.f32 1.442695, %v4161_v55 }
 0x1ef   :  { %5048 = vpow2.f32 %v4172_v57  ;;  %4186 = vadd.xlane.f32.xlu0 %v4185_v58 }
 0x1f3   :  { %4189 = vadd.xlane.f32.xlu0 %v4188_v53 }
 0x1fc   :  { %v6089_v59 = vpop.eup %5048 }
 0x1fd   :  { %v4191_v27 = vsel %vm3966_vm2, %v6089_v59, 0.0 }
 0x1fe   :  { %4192 = vadd.xlane.f32.xlu1 %v4191_v27 }
 0x208   :  { %v3981_v60 = vpop.xlane.xlu0 %3980 }
 0x209   :  { %v4162_v62 = vsub.f32 %v6048_v44, %v3981_v60 }
 0x20b   :  { %v4174_v63 = vmul.f32 1.442695, %v4162_v62 }
 0x20d   :  { %5050 = vpow2.f32 %v4174_v63 }
 0x21a   :  { %v6094_v1 = vpop.eup %5050 }
 0x21b   :  { %v4194_v2 = vsel %vm3966_vm2, %v6094_v1, 0.0 }
 0x21c   :  { %4195 = vadd.xlane.f32.xlu0 %v4194_v2 }
 0x226   :  { %v3984_v3 = vpop.xlane.xlu1 %3983 }
 0x227   :  { %v4163_v4 = vsub.f32 %v6052_v61, %v3984_v3 }
 0x229   :  { %v4176_v5 = vmul.f32 1.442695, %v4163_v4 }
 0x22a   :  { %v4017_v13 = vpop.permute.xlu1 %4016 }
 0x22b   :  { %5052 = vpow2.f32 %v4176_v5 }
 0x238   :  { %v6099_v7 = vpop.eup %5052 }
 0x239   :  { %v4197_v8 = vsel %vm3966_vm2, %v6099_v7, 0.0 }
 0x23a   :  { %4198 = vadd.xlane.f32.xlu1 %v4197_v8 }
 0x243   :  { %v3987_v44 = vpop.xlane.xlu0 %3986 }
 0x244   :  { %v4164_v9 = vsub.f32 %v6061_v21, %v3987_v44 }
 0x246   :  { %v4178_v10 = vmul.f32 1.442695, %v4164_v9 }
 0x247   :  { %v3999_v11 = vpop.permute.xlu0 %3998 }
 0x248   :  { %5054 = vpow2.f32 %v4178_v10  ;;  %v4001_v14 = vsub.f32 %v6059_v19, %v3999_v11  ;;  %v4002_v15 = vsub.f32 %v3972_v45, %v3999_v11  ;;  %v4003_v16 = vsub.f32 %v3975_v49, %v3999_v11 }
 0x249   :  { %v4004_v61 = vsub.f32 %v3978_v0, %v3999_v11  ;;  %v4005_v24 = vsub.f32 %v3981_v60, %v3999_v11  ;;  %v4006_v31 = vsub.f32 %v3984_v3, %v3999_v11  ;;  %v4007_v33 = vsub.f32 %v3987_v44, %v3999_v11 }
 0x24a   :  { %v4019_v18 = vmul.f32 %v4017_v13, %v4001_v14  ;;  %v4020_v20 = vmul.f32 %v4017_v13, %v4002_v15  ;;  %v4021_v23 = vmul.f32 %v4017_v13, %v4003_v16 }
 0x24b   :  { %v4022_v25 = vmul.f32 %v4017_v13, %v4004_v61  ;;  %v4023_v21 = vmul.f32 %v4017_v13, %v4005_v24  ;;  %v4024_v29 = vmul.f32 %v4017_v13, %v4006_v31  ;;  %v4025_v35 = vmul.f32 %v4017_v13, %v4007_v33 }
 0x24c   :  { %v4254_v26 = vmul.f32 -1.442695, %v4019_v18  ;;  %v4255_v28 = vmul.f32 -1.442695, %v4020_v20  ;;  %v4256_v30 = vmul.f32 -1.442695, %v4021_v23 }
 0x24d   :  { %v4257_v32 = vmul.f32 -1.442695, %v4022_v25  ;;  %v4258_v19 = vmul.f32 -1.442695, %v4023_v21  ;;  %v4259_v36 = vmul.f32 -1.442695, %v4024_v29 }
 0x24e   :  { %5056 = vpow2.f32 %v4254_v26  ;;  %v4260_v38 = vmul.f32 -1.442695, %v4025_v35 }
 0x24f   :  { %5058 = vpow2.f32 %v4255_v28 }
 0x250   :  { %5060 = vpow2.f32 %v4256_v30 }
 0x251   :  { %5062 = vpow2.f32 %v4257_v32 }
 0x252   :  { %5064 = vpow2.f32 %v4258_v19  ;;  %v4107_v19 = vlaneseq }
 0x253   :  { %5066 = vpow2.f32 %v4259_v36 }
 0x254   :  { %v4108_v35 = vand.u32 127, %v4107_v19  ;;  %v4110_v36 = vshrl.u32 %v4107_v19, 7 }
 0x255   :  { %v6105_v34 = vpop.eup %5054 }
 0x256   :  { %v4200_v37 = vsel %vm3966_vm2, %v6105_v34, 0.0 }
 0x257   :  { %4201 = vadd.xlane.f32.xlu0 %v4200_v37 }
 0x25b   :  { %v4184_v17 = vpop.xlane.xlu1 %4183  ;;  %v5057_v40 = vpop.eup %5056 }
 0x25c   :  { %5068 = vrcp.f32 %v4184_v17  ;;  %v5059_v22 = vpop.eup %5058  ;;  %v4051_v41 = vadd.f32 1.0, %v5057_v40 }
 0x25d   :  { %v5061_v42 = vpop.eup %5060  ;;  %5070 = vpow2.f32 %v4260_v38  ;;  %v4052_v43 = vadd.f32 1.0, %v5059_v22  ;;  %v4111_v38 = vsub.s32 %v4108_v35, %v4110_v36 }
 0x25e   :  { %5072 = vrcp.f32 %v4051_v41  ;;  %v4053_v45 = vadd.f32 1.0, %v5061_v42  ;;  %v5063_v48 = vpop.eup %5062 }
 0x25f   :  { %5074 = vrcp.f32 %v4052_v43  ;;  %v3990_v47 = vpop.xlane.xlu1 %3989  ;;  %v4054_v51 = vadd.f32 1.0, %v5063_v48  ;;  %v5065_v52 = vpop.eup %5064 }
 0x260   :  { %v4008_v49 = vsub.f32 %v3990_v47, %v3999_v11  ;;  %5076 = vrcp.f32 %v4053_v45  ;;  %v5067_v54 = vpop.eup %5066  ;;  %v4055_v0 = vadd.f32 1.0, %v5065_v52  ;;  %v4165_v11 = vsub.f32 %v6074_v46, %v3990_v47 }
 0x261   :  { %5078 = vrcp.f32 %v4054_v51  ;;  %v4056_v6 = vadd.f32 1.0, %v5067_v54 }
 0x262   :  { %v4026_v50 = vmul.f32 %v4017_v13, %v4008_v49  ;;  %5080 = vrcp.f32 %v4055_v0  ;;  %v4180_v14 = vmul.f32 1.442695, %v4165_v11 }
 0x263   :  { %5082 = vrcp.f32 %v4056_v6 }
 0x264   :  { %v4261_v15 = vmul.f32 -1.442695, %v4026_v50 }
 0x269   :  { %v5069_v55 = vpop.eup %5068 }
 0x26a   :  { %v4207_v57 = vmul.f32 %v5069_v55, %v6067_v39  ;;  %v5071_v58 = vpop.eup %5070 }
 0x26b   :  { %v5073_v53 = vpop.eup %5072  ;;  %v4057_v60 = vadd.f32 1.0, %v5071_v58 }
 0x26c   :  { %4222 = vst.msk [vmem:[#allocation7] sm:$0xf] %vm3966_vm2, %v4207_v57  ;;  %v5075_v27 = vpop.eup %5074 }
 0x26d   :  { %4087 = vperm.xlu1 %5041, %v5075_v27   ;;  %4084 = vperm.xlu0 %5040, %v5073_v53   ;;  %v5077_v62 = vpop.eup %5076  ;;  %5084 = vrcp.f32 %v4057_v60 }
 0x26e   :  { %v5079_v63 = vpop.eup %5078 }
 0x26f   :  { %v5081_v2 = vpop.eup %5080 }
 0x270   :  { %v5083_v39 = vpop.eup %5082 }
 0x271   :  { %4090 = vperm.xlu1 %5041, %v5077_v62  }
 0x275   :  { %4093 = vperm.xlu1 %5041, %v5079_v63  }
 0x278   :  { %v4187_v3 = vpop.xlane.xlu0 %4186 }
 0x279   :  { %5086 = vrcp.f32 %v4187_v3  ;;  %4096 = vperm.xlu1 %5041, %v5081_v2  }
 0x27a   :  { %v5085_v5 = vpop.eup %5084 }
 0x27c   :  { %v4190_v4 = vpop.xlane.xlu0 %4189 }
 0x27d   :  { %4099 = vperm.xlu1 %5041, %v5083_v39   ;;  %5088 = vrcp.f32 %v4190_v4 }
 0x281   :  { %4102 = vperm.xlu1 %5041, %v5085_v5  }
 0x286   :  { %v5087_v8 = vpop.eup %5086 }
 0x287   :  { %v4193_v44 = vpop.xlane.xlu1 %4192  ;;  %v4209_v9 = vmul.f32 %v5087_v8, %v6081_v56 }
 0x288   :  { %5090 = vrcp.f32 %v4193_v44 }
 0x289   :  { %4223 = vst.msk [vmem:[#allocation7 + $0x4] sm:$0xf] %vm3966_vm2, %v4209_v9  ;;  %5092 = vpow2.f32 %v4180_v14 }
 0x28a   :  { %v5089_v10 = vpop.eup %5088  ;;  %5094 = vpow2.f32 %v4261_v15 }
 0x28b   :  { %v4211_v13 = vmul.f32 %v5089_v10, %v6083_v12 }
 0x28d   :  { %4224 = vst.msk [vmem:[#allocation7 + $0x8] sm:$0xf] %vm3966_vm2, %v4211_v13 }
 0x295   :  { %v5091_v16 = vpop.eup %5090 }
 0x296   :  { %v4213_v61 = vmul.f32 %v5091_v16, %v6089_v59  ;;  %v6118_v56 = vpop.eup %5092 }
 0x297   :  { %v5095_v18 = vpop.eup %5094  ;;  %v4203_v46 = vsel %vm3966_vm2, %v6118_v56, 0.0 }
 0x298   :  { %4225 = vst.msk [vmem:[#allocation7 + $0xc] sm:$0xf] %vm3966_vm2, %v4213_v61  ;;  %v4058_v20 = vadd.f32 1.0, %v5095_v18 }
 0x2a5   :  { %v4196_v23 = vpop.xlane.xlu0 %4195  ;;  %4204 = vadd.xlane.f32.xlu1 %v4203_v46 }
 0x2a6   :  { %5096 = vrcp.f32 %v4196_v23 }
 0x2a7   :  { %5098 = vrcp.f32 %v4058_v20 }
 0x2b3   :  { %v5097_v12 = vpop.eup %5096 }
 0x2b4   :  { %v4215_v24 = vmul.f32 %v5097_v12, %v6094_v1  ;;  %v5099_v25 = vpop.eup %5098 }
 0x2b6   :  { %4226 = vst.msk [vmem:[#allocation7 + $0x10] sm:$0xf] %vm3966_vm2, %v4215_v24  ;;  %4105 = vperm.xlu1 %5041, %v5099_v25  }
 0x2c3   :  { %v4199_v59 = vpop.xlane.xlu1 %4198 }
 0x2c4   :  { %5100 = vrcp.f32 %v4199_v59 }
 0x2d1   :  { %v5101_v26 = vpop.eup %5100 }
 0x2d2   :  { %v4217_v28 = vmul.f32 %v5101_v26, %v6099_v7 }
 0x2d4   :  { %4227 = vst.msk [vmem:[#allocation7 + $0x14] sm:$0xf] %vm3966_vm2, %v4217_v28 }
 0x2e0   :  { %v4202_v30 = vpop.xlane.xlu0 %4201 }
 0x2e1   :  { %5102 = vrcp.f32 %v4202_v30 }
 0x2e8   :  { %v4088_v32 = vpop.permute.xlu1 %4087  ;;  %v4085_v17 = vpop.permute.xlu0 %4084 }
 0x2e9   :  { %v4116_v40 = vrot.slane %v4088_v32, %v4111_v38  ;;  %v4112_v22 = vrot.slane %v4085_v17, %v4111_v38 }
 0x2eb   :  { %v4142_v45 = vsel %vm4141_vm3, %v4116_v40, %v4112_v22 }
 0x2ec   :  { %v4091_v1 = vpop.permute.xlu1 %4090 }
 0x2ed   :  { %v4120_v41 = vrot.slane %v4091_v1, %v4111_v38 }
 0x2ee   :  { %v5103_v31 = vpop.eup %5102 }
 0x2ef   :  { %v4219_v21 = vmul.f32 %v5103_v31, %v6105_v34  ;;  %v4144_v48 = vsel %vm4143_vm4, %v4120_v41, %v4142_v45 }
 0x2f0   :  { %v4094_v33 = vpop.permute.xlu1 %4093 }
 0x2f1   :  { %4228 = vst.msk [vmem:[#allocation7 + $0x18] sm:$0xf] %vm3966_vm2, %v4219_v21  ;;  %v4124_v42 = vrot.slane %v4094_v33, %v4111_v38 }
 0x2f3   :  { %v4146_v50 = vsel %vm4145_vm5, %v4124_v42, %v4144_v48 }
 0x2f4   :  { %v4097_v29 = vpop.permute.xlu1 %4096 }
 0x2f5   :  { %v4128_v34 = vrot.slane %v4097_v29, %v4111_v38 }
 0x2f7   :  { %v4148_v51 = vsel %vm4147_vm6, %v4128_v34, %v4146_v50 }
 0x2f8   :  { %v4100_v37 = vpop.permute.xlu1 %4099 }
 0x2f9   :  { %v4132_v47 = vrot.slane %v4100_v37, %v4111_v38 }
 0x2fb   :  { %v4150_v54 = vsel %vm4149_vm7, %v4132_v47, %v4148_v51 }
 0x2fc   :  { %v4103_v7 = vpop.permute.xlu1 %4102 }
 0x2fd   :  { %v4136_v49 = vrot.slane %v4103_v7, %v4111_v38 }
 0x2ff   :  { %v4152_v55 = vsel %vm4151_vm8, %v4136_v49, %v4150_v54 }
 0x32e   :  { %v4205_v43 = vpop.xlane.xlu1 %4204 }
 0x32f   :  { %5104 = vrcp.f32 %v4205_v43 }
 0x332   :  { %v4106_v52 = vpop.permute.xlu1 %4105 }
 0x333   :  { %v4140_v0 = vrot.slane %v4106_v52, %v4111_v38 }
 0x335   :  { %v4154_v57 = vsel %vm4153_vm9, %v4140_v0, %v4152_v55 }
 0x336   :  { %4157 = vst.msk [vmem:[%s6142_s6] sm:$0xff] %vm4156_vm10, %v4154_v57 }
 0x33c   :  { %v5105_v58 = vpop.eup %5104 }
 0x33d   :  { %v4221_v53 = vmul.f32 %v5105_v58, %v6118_v56 }
 0x33f   :  { %4229 = vst.msk [vmem:[#allocation7 + $0x1c] sm:$0xf] %vm3966_vm2, %v4221_v53 }
 0x340   :  { %5157 = shalt.err (!%p5154_p0)
}
 0x341   :  { %s5180_s13 = smov 64   ;;  %s5181_s14 = smov 4  }
 0x342   :  { %4241 = dma.vmem_to_hbm [thread:$0]  %s4236_s11, 512, %s6141_s5, [#allocation4], %s5180_s13, %s5180_s13, %s5181_s14  }
 0x343   :  { %5170 = dma.done.wait [#allocation4], 512  }
 0x344   :  { %5171 = vsyncadd [#allocation4], 4294966784 }
 0x345   :  { %4249 = vsyncpa [#allocation3], 1 }
 0x346   :  { %4250 = vsyncpa [#allocation6], 1 }
 0x347   :  { %4251 = vsyncpa [#allocation4], 1 }

</bundles_post_ra>
